<compile_context>
chip_gen: v5e
topology: v5e:2x2
jax: 0.10.0
libtpu: 0.0.40
codegen_flags: <defaults>
</compile_context>

<pallas_src>
import functools

import jax
import jax.numpy as jnp
from jax import lax
from jax.experimental import pallas as pl
from jax.experimental.pallas import tpu as pltpu

EPS = 1e-15
CURVATURE = 1.0        # PoincareBall curvature c > 0
LANE = 128             # TPU lane width; feature axis is padded to a multiple of this
TILE_N = 256           # rows per grid step (multiple of 8).  Sweep up to 512-1024 on
                       # v5e/v6e; keep <=256-512 on v7x (half the VMEM of v6e).
VMEM_LIMIT = 32 * 1024 * 1024


# ----------------------------- hyperbolic math ----------------------------- #
# Pure-jnp helpers: used (a) as the reference implementation and (b) for the
# tiny (1, D) glue between kernel passes.

def _artanh(x):
    x = jnp.clip(x, -1.0 + 1e-7, 1.0 - 1e-7)
    return 0.5 * jnp.log((1.0 + x) / (1.0 - x))


def _norm(x):
    return jnp.sqrt(jnp.maximum(jnp.sum(x * x, axis=-1, keepdims=True), EPS))


def _lambda_x(x, c):
    return 2.0 / jnp.maximum(1.0 - c * jnp.sum(x * x, axis=-1, keepdims=True), EPS)


def _mobius_add(x, y, c):
    x2 = jnp.sum(x * x, axis=-1, keepdims=True)
    y2 = jnp.sum(y * y, axis=-1, keepdims=True)
    xy = jnp.sum(x * y, axis=-1, keepdims=True)
    num = (1.0 + 2.0 * c * xy + c * y2) * x + (1.0 - c * x2) * y
    den = 1.0 + 2.0 * c * xy + c * c * x2 * y2
    return num / jnp.maximum(den, EPS)


def _expmap0(u, c):
    sqrt_c = c ** 0.5
    u_norm = _norm(u)
    return jnp.tanh(sqrt_c * u_norm) * u / (sqrt_c * u_norm)


def _logmap0(y, c):
    sqrt_c = c ** 0.5
    y_norm = _norm(y)
    return _artanh(sqrt_c * y_norm) * y / (sqrt_c * y_norm)


def _expmap(x, u, c):
    sqrt_c = c ** 0.5
    u_norm = _norm(u)
    second = jnp.tanh(sqrt_c * _lambda_x(x, c) * u_norm / 2.0) * u / (sqrt_c * u_norm)
    return _mobius_add(x, second, c)


def _logmap(x, y, c):
    sqrt_c = c ** 0.5
    sub = _mobius_add(-x, y, c)
    sub_norm = _norm(sub)
    lam = _lambda_x(x, c)
    return (2.0 / (sqrt_c * lam)) * _artanh(sqrt_c * sub_norm) * sub / sub_norm


def _dist(x, y, c):
    sqrt_c = c ** 0.5
    return (2.0 / sqrt_c) * _artanh(sqrt_c * _norm(_mobius_add(-x, y, c)))


def _gyration(u, v, w, c):
    u2 = jnp.sum(u * u, axis=-1, keepdims=True)
    v2 = jnp.sum(v * v, axis=-1, keepdims=True)
    uv = jnp.sum(u * v, axis=-1, keepdims=True)
    uw = jnp.sum(u * w, axis=-1, keepdims=True)
    vw = jnp.sum(v * w, axis=-1, keepdims=True)
    c2 = c * c
    a = -c2 * uw * v2 - c * vw + 2.0 * c2 * uv * vw
    b = -c2 * vw * u2 + c * uw
    d = 1.0 + 2.0 * c * uv + c2 * u2 * v2
    return w + 2.0 * (a * u + b * v) / jnp.maximum(d, EPS)


def _transp(x, y, v, c):
    return _gyration(y, -x, v, c) * _lambda_x(x, c) / _lambda_x(y, c)


def _mobius_scalar_mul(r, x, c):
    sqrt_c = c ** 0.5
    x_norm = _norm(x)
    return jnp.tanh(r * _artanh(sqrt_c * x_norm)) * x / (sqrt_c * x_norm)


def _poincare_midpoint(x, c):
    lam = _lambda_x(x, c)                                # (N, 1)
    num = jnp.sum(lam * x, axis=0, keepdims=True)        # (1, D)
    den = jnp.sum(lam - 1.0, axis=0, keepdims=True)      # (1, 1)
    t = num / jnp.maximum(den, EPS)
    return _mobius_scalar_mul(0.5, t, c)                 # (1, D)


def _poincare_bn_forward(x, mean_param, var_param, c):
    """Reference (faithful to the original module math, incl. separate _dist)."""
    x_ball = _expmap0(x, c)                              # (N, D)
    mean_on_ball = _expmap0(mean_param, c)               # (1, D)
    input_mean = _poincare_midpoint(x_ball, c)           # (1, D)
    d = _dist(x_ball, input_mean, c)                     # (N, 1)
    input_var = jnp.mean(d * d, keepdims=True)           # (1, 1)
    v = _logmap(input_mean, x_ball, c)                   # (N, D)
    pt = _transp(input_mean, mean_on_ball, v, c)         # (N, D)
    scale = jnp.sqrt(var_param / (input_var + 1e-6))     # (1, 1)
    out_ball = _expmap(mean_on_ball, scale * pt, c)      # (N, D)
    return _logmap0(out_ball, c)                         # (N, D)


# --------------------------- in-kernel primitives --------------------------- #

def _ball_project(x, c):
    """x -> (x_ball, ||x_ball||^2, lambda_{x_ball}) with a single cross-lane reduce.

    ||expmap0(x)||^2 == tanh(sqrt_c*||x||)^2 / c, so the second reduction the
    naive code does is derived for free (review item: dedup reductions)."""
    sqrt_c = c ** 0.5
    xsq = jnp.sum(x * x, axis=-1, keepdims=True)          # (T, 1)
    xnorm = jnp.sqrt(jnp.maximum(xsq, EPS))
    th = jnp.tanh(sqrt_c * xnorm)
    x_ball = (th / (sqrt_c * xnorm)) * x
    xb2 = th * th / c
    lam = 2.0 / jnp.maximum(1.0 - c * xb2, EPS)
    return x_ball, xb2, lam


def _row_mask(tile, n_valid):
    rows = lax.broadcasted_iota(jnp.int32, (tile, 1), 0) + pl.program_id(0) * tile
    return (rows < n_valid).astype(jnp.float32)


# ------------------------------ Pallas kernels ------------------------------ #

def _midpoint_stats_kernel(x_ref, num_ref, den_ref, *, tile, n_valid, needs_mask, c):
    """Pass 1: accumulate sum(lam * x_ball) and sum(lam - 1) over the batch."""
    @pl.when(pl.program_id(0) == 0)
    def _():
        num_ref[...] = jnp.zeros_like(num_ref)
        den_ref[...] = jnp.zeros_like(den_ref)

    x_ball, _, lam = _ball_project(x_ref[...], c)
    w = lam
    d = lam - 1.0
    if needs_mask:
        mask = _row_mask(tile, n_valid)
        w = w * mask
        d = d * mask
    num_ref[...] += jnp.sum(w * x_ball, axis=0, keepdims=True)
    den_ref[...] += jnp.sum(d, axis=0, keepdims=True)


def _frechet_var_kernel(x_ref, mean_ref, d2_ref, *, tile, n_valid, needs_mask, c):
    """Pass 2: accumulate sum(dist(x_ball, input_mean)^2) over the batch.

    Distance is taken from the mobius_add(-input_mean, x_ball) / artanh chain
    (the same one the logmap uses), with the midpoint's squared norm hoisted."""
    @pl.when(pl.program_id(0) == 0)
    def _():
        d2_ref[...] = jnp.zeros_like(d2_ref)

    sqrt_c = c ** 0.5
    m = mean_ref[...]                                     # (1, Dp)
    m2 = jnp.sum(m * m, axis=-1, keepdims=True)           # (1, 1) — hoisted

    x_ball, xb2, _ = _ball_project(x_ref[...], c)
    mx = jnp.sum(m * x_ball, axis=-1, keepdims=True)      # (T, 1) — the only per-row dot

    # sub = mobius_add(-m, x_ball) with x2 = m2 (hoisted), y2 = xb2 (derived)
    num = (1.0 - 2.0 * c * mx + c * xb2) * (-m) + (1.0 - c * m2) * x_ball
    den = 1.0 - 2.0 * c * mx + c * c * m2 * xb2
    sub = num / jnp.maximum(den, EPS)
    sub_n = jnp.sqrt(jnp.maximum(jnp.sum(sub * sub, axis=-1, keepdims=True), EPS))
    dist = (2.0 / sqrt_c) * _artanh(sqrt_c * sub_n)
    d2 = dist * dist
    if needs_mask:
        d2 = d2 * _row_mask(tile, n_valid)
    d2_ref[...] += jnp.sum(d2, axis=0, keepdims=True)


def _transform_kernel(x_ref, mean_ref, mob_ref, scale_ref, o_ref, *, c):
    """Pass 3: per-row logmap -> parallel transport -> rescale -> expmap -> logmap0."""
    sqrt_c = c ** 0.5
    c2 = c * c

    # ---- hoisted (1, Dp)/(1, 1) quantities — built once per tile-step ----
    m = mean_ref[...]                                     # input_mean
    mb = mob_ref[...]                                     # mean_on_ball
    m2 = jnp.sum(m * m, axis=-1, keepdims=True)
    mb2 = jnp.sum(mb * mb, axis=-1, keepdims=True)
    mmb = jnp.sum(m * mb, axis=-1, keepdims=True)
    lam_m = 2.0 / jnp.maximum(1.0 - c * m2, EPS)
    lam_mb = 2.0 / jnp.maximum(1.0 - c * mb2, EPS)
    s_tot = scale_ref[...] * (lam_m / lam_mb)             # BN scale * conformal ratio
    uv = -mmb                                             # <mb, -m>
    gyr_den = jnp.maximum(1.0 + 2.0 * c * uv + c2 * mb2 * m2, EPS)

    # ---- per-row chain (8 cross-lane reductions total) ----
    x_ball, xb2, _ = _ball_project(x_ref[...], c)                       # reduce 1
    mx = jnp.sum(m * x_ball, axis=-1, keepdims=True)                    # reduce 2

    # v = logmap(input_mean, x_ball)
    sub_num = (1.0 - 2.0 * c * mx + c * xb2) * (-m) + (1.0 - c * m2) * x_ball
    sub_den = 1.0 - 2.0 * c * mx + c2 * m2 * xb2
    sub = sub_num / jnp.maximum(sub_den, EPS)
    sub_n = jnp.sqrt(jnp.maximum(jnp.sum(sub * sub, axis=-1, keepdims=True), EPS))  # 3
    v = (2.0 / (sqrt_c * lam_m)) * _artanh(sqrt_c * sub_n) / sub_n * sub

    # parallel transport via gyration(u=mb, v=-m, w=v); u2/v2/uv hoisted above
    uw = jnp.sum(mb * v, axis=-1, keepdims=True)                        # reduce 4
    vw = -jnp.sum(m * v, axis=-1, keepdims=True)                        # reduce 5
    a = -c2 * uw * m2 - c * vw + 2.0 * c2 * uv * vw
    b = -c2 * vw * mb2 + c * uw
    gyr = v + 2.0 * (a * mb + b * (-m)) / gyr_den
    u_s = s_tot * gyr                                     # scale * transp(...)

    # expmap(mean_on_ball, u_s); ||second||^2 derived as tanh^2 / c
    un = jnp.sqrt(jnp.maximum(jnp.sum(u_s * u_s, axis=-1, keepdims=True), EPS))      # 6
    th = jnp.tanh(sqrt_c * lam_mb * un / 2.0)
    second = (th / (sqrt_c * un)) * u_s
    sec2 = th * th / c
    sxy = jnp.sum(mb * second, axis=-1, keepdims=True)                  # reduce 7
    ob_num = (1.0 + 2.0 * c * sxy + c * sec2) * mb + (1.0 - c * mb2) * second
    ob_den = 1.0 + 2.0 * c * sxy + c2 * mb2 * sec2
    out_ball = ob_num / jnp.maximum(ob_den, EPS)

    # logmap0
    obn = jnp.sqrt(jnp.maximum(jnp.sum(out_ball * out_ball, axis=-1, keepdims=True),
                               EPS))                                     # reduce 8
    o_ref[...] = (_artanh(sqrt_c * obn) / (sqrt_c * obn)) * out_ball


# --------------------------------- wrapper ---------------------------------- #

def _round_up(v, m):
    return (v + m - 1) // m * m


@jax.jit
def poincare_batch_norm(x, mean_param, var_param):
    """x: (N, D) f32; mean_param: (1, D); var_param: (1,) — module forward."""
    c = CURVATURE
    N, D = x.shape
    Dp = _round_up(D, LANE)                 # lane-dense feature axis
    Np8 = _round_up(N, 8)
    tile = min(TILE_N, Np8)
    Np = _round_up(Np8, tile)
    n_tiles = Np // tile
    needs_mask = Np != N

    xp = jnp.pad(x.astype(jnp.float32), ((0, Np - N), (0, Dp - D)))
    mp = jnp.pad(mean_param.astype(jnp.float32), ((0, 0), (0, Dp - D)))

    x_spec = pl.BlockSpec((tile, Dp), lambda i: (i, 0))
    row_spec = pl.BlockSpec((1, Dp), lambda i: (0, 0))
    one_spec = pl.BlockSpec((1, 1), lambda i: (0, 0))

    reduce_params = pltpu.CompilerParams(
        dimension_semantics=("arbitrary",), vmem_limit_bytes=VMEM_LIMIT)

    # ---- pass 1: gyro-midpoint statistics (reduction over N) ----
    num, den = pl.pallas_call(
        functools.partial(_midpoint_stats_kernel, tile=tile, n_valid=N,
                          needs_mask=needs_mask, c=c),
        grid=(n_tiles,),
        in_specs=[x_spec],
        out_specs=[row_spec, one_spec],
        out_shape=[jax.ShapeDtypeStruct((1, Dp), jnp.float32),
                   jax.ShapeDtypeStruct((1, 1), jnp.float32)],
        compiler_params=reduce_params,
    )(xp)

    # tiny (1, D) glue (same math as the reference helpers)
    t = num / jnp.maximum(den, EPS)
    input_mean = _mobius_scalar_mul(0.5, t, c)            # (1, Dp)
    mean_on_ball = _expmap0(mp, c)                        # (1, Dp)

    # ---- pass 2: Frechet variance (reduction over N) ----
    d2sum = pl.pallas_call(
        functools.partial(_frechet_var_kernel, tile=tile, n_valid=N,
                          needs_mask=needs_mask, c=c),
        grid=(n_tiles,),
        in_specs=[x_spec, row_spec],
        out_specs=one_spec,
        out_shape=jax.ShapeDtypeStruct((1, 1), jnp.float32),
        compiler_params=reduce_params,
    )(xp, input_mean)

    input_var = d2sum / N                                 # (1, 1)
    scale = jnp.sqrt(var_param[0] / (input_var + 1e-6))   # (1, 1)

    # ---- pass 3: per-row transform ("parallel" -> shards over v7x's 2 TCs) ----
    out = pl.pallas_call(
        functools.partial(_transform_kernel, c=c),
        grid=(n_tiles,),
        in_specs=[x_spec, row_spec, row_spec, one_spec],
        out_specs=x_spec,
        out_shape=jax.ShapeDtypeStruct((Np, Dp), jnp.float32),
        compiler_params=pltpu.CompilerParams(
            dimension_semantics=("parallel",), vmem_limit_bytes=VMEM_LIMIT),
    )(xp, input_mean, mean_on_ball, scale)

    return out[:N, :D]


# TODO(synk): running_mean / running_var buffers, the `updates` counter and the
# NaN debug prints are training-side Python state that do not affect the
# returned tensor; they are not reproduced in the kernels.

if __name__ == "__main__":
    key = jax.random.PRNGKey(0)
    N, D = 8, 32  # batch=8, features=32

    # Modest magnitudes keep points away from the ball boundary so the f32
    # roundoff of the (algebraically equivalent) fused kernel stays well inside
    # the 1e-5 comparison tolerance.
    x = 0.25 * jax.random.normal(key, (N, D), dtype=jnp.float32)
    # Module __init__: mean = zeros(features), var = tensor(1.0)
    mean_param = jnp.zeros((1, D), dtype=jnp.float32)
    var_param = jnp.ones((1,), dtype=jnp.float32)

    out = poincare_batch_norm(x, mean_param, var_param)
    out = jax.block_until_ready(out)

    # Pure-JAX reference (original, un-refactored formulation)
    ref = _poincare_bn_forward(x, mean_param, var_param[0], CURVATURE)

    assert out.shape == (N, D)
    assert bool(jnp.all(jnp.isfinite(out)))
    assert bool(jnp.allclose(out, ref, atol=1e-5, rtol=1e-5)), "mismatch vs reference"

    print("KERNEL_OK")
</pallas_src>

<mosaic_0001>
module attributes {stable_mosaic.version = 11 : i64} {
  func.func @_frechet_var_kernel(%arg0: i32, %arg1: memref<8x128xf32, #tpu.memory_space<vmem>>, %arg2: memref<1x128xf32, #tpu.memory_space<vmem>>, %arg3: memref<1x1xf32, #tpu.memory_space<vmem>>) attributes {dimension_semantics = [#tpu.dimension_semantics<arbitrary>], iteration_bounds = array<i64: 1>, scalar_prefetch = 0 : i64, scratch_operands = 0 : i64, tpu.core_type = #tpu.core_type<tc>, window_params = [{transform_indices = @transform_0, window_bounds = array<i64: 8, 128>}, {pipeline_mode = #tpu.pipeline_mode<synchronous>, transform_indices = @transform_1, window_bounds = array<i64: 1, 128>}, {pipeline_mode = #tpu.pipeline_mode<synchronous>, transform_indices = @transform_2, window_bounds = array<i64: 1, 1>}]} {
    %c0_i32 = arith.constant 0 : i32
    %0 = arith.cmpi eq, %arg0, %c0_i32 : i32
    %1 = arith.extui %0 : i1 to i32
    %c0_i32_0 = arith.constant 0 : i32
    %2 = arith.cmpi ne, %1, %c0_i32_0 : i32
    scf.if %2 {
      %cst_34 = arith.constant 0.000000e+00 : f32
      %89 = vector.broadcast %cst_34 : f32 to vector<1x1xf32>
      %c0_35 = arith.constant 0 : index
      %c0_36 = arith.constant 0 : index
      %90 = vector.load %arg3[%c0_35, %c0_36] : memref<1x1xf32, #tpu.memory_space<vmem>>, vector<1x1xf32>
      tpu.vector_store %arg3[%c0_35, %c0_36], %89 {strides = array<i32>} : memref<1x1xf32, #tpu.memory_space<vmem>>, vector<1x1xf32>,
    } else {
    }
    %c0 = arith.constant 0 : index
    %c0_1 = arith.constant 0 : index
    %3 = vector.load %arg2[%c0, %c0_1] : memref<1x128xf32, #tpu.memory_space<vmem>>, vector<1x128xf32>
    %4 = arith.mulf %3, %3 : vector<1x128xf32>
    %cst = arith.constant dense<0.000000e+00> : vector<1xf32>
    %5 = vector.multi_reduction <add>, %4, %cst [1] : vector<1x128xf32> to vector<1xf32>
    %6 = vector.shape_cast %5 : vector<1xf32> to vector<1x1xf32>
    %c0_2 = arith.constant 0 : index
    %c0_3 = arith.constant 0 : index
    %7 = vector.load %arg1[%c0_2, %c0_3] : memref<8x128xf32, #tpu.memory_space<vmem>>, vector<8x128xf32>
    %8 = arith.mulf %7, %7 : vector<8x128xf32>
    %cst_4 = arith.constant dense<0.000000e+00> : vector<8xf32>
    %9 = vector.multi_reduction <add>, %8, %cst_4 [1] : vector<8x128xf32> to vector<8xf32>
    %10 = vector.shape_cast %9 : vector<8xf32> to vector<8x1xf32>
    %cst_5 = arith.constant 1.000000e-15 : f32
    %11 = vector.broadcast %cst_5 : f32 to vector<8x1xf32>
    %12 = arith.maximumf %10, %11 : vector<8x1xf32>
    %13 = math.sqrt %12 : vector<8x1xf32>
    %cst_6 = arith.constant 1.000000e+00 : f32
    %14 = vector.broadcast %cst_6 : f32 to vector<8x1xf32>
    %15 = arith.mulf %14, %13 : vector<8x1xf32>
    %16 = math.tanh %15 : vector<8x1xf32>
    %cst_7 = arith.constant 1.000000e+00 : f32
    %17 = vector.broadcast %cst_7 : f32 to vector<8x1xf32>
    %18 = arith.mulf %17, %13 : vector<8x1xf32>
    %19 = arith.divf %16, %18 : vector<8x1xf32>
    %20 = vector.broadcast %19 : vector<8x1xf32> to vector<8x128xf32>
    %21 = arith.mulf %20, %7 : vector<8x128xf32>
    %22 = arith.mulf %16, %16 : vector<8x1xf32>
    %cst_8 = arith.constant 1.000000e+00 : f32
    %23 = vector.broadcast %cst_8 : f32 to vector<8x1xf32>
    %24 = arith.divf %22, %23 : vector<8x1xf32>
    %25 = vector.broadcast %3 : vector<1x128xf32> to vector<8x128xf32>
    %26 = arith.mulf %25, %21 : vector<8x128xf32>
    %cst_9 = arith.constant dense<0.000000e+00> : vector<8xf32>
    %27 = vector.multi_reduction <add>, %26, %cst_9 [1] : vector<8x128xf32> to vector<8xf32>
    %28 = vector.shape_cast %27 : vector<8xf32> to vector<8x1xf32>
    %cst_10 = arith.constant 2.000000e+00 : f32
    %29 = vector.broadcast %cst_10 : f32 to vector<8x1xf32>
    %30 = arith.mulf %29, %28 : vector<8x1xf32>
    %cst_11 = arith.constant 1.000000e+00 : f32
    %31 = vector.broadcast %cst_11 : f32 to vector<8x1xf32>
    %32 = arith.subf %31, %30 : vector<8x1xf32>
    %cst_12 = arith.constant 1.000000e+00 : f32
    %33 = vector.broadcast %cst_12 : f32 to vector<8x1xf32>
    %34 = arith.mulf %33, %24 : vector<8x1xf32>
    %35 = arith.addf %32, %34 : vector<8x1xf32>
    %cst_13 = arith.constant 0.000000e+00 : f32
    %36 = vector.broadcast %cst_13 : f32 to vector<1x128xf32>
    %37 = arith.subf %36, %3 : vector<1x128xf32>
    %38 = vector.broadcast %35 : vector<8x1xf32> to vector<8x128xf32>
    %39 = vector.broadcast %37 : vector<1x128xf32> to vector<8x128xf32>
    %40 = arith.mulf %38, %39 : vector<8x128xf32>
    %cst_14 = arith.constant 1.000000e+00 : f32
    %41 = vector.broadcast %cst_14 : f32 to vector<1x1xf32>
    %42 = arith.mulf %41, %6 : vector<1x1xf32>
    %cst_15 = arith.constant 1.000000e+00 : f32
    %43 = vector.broadcast %cst_15 : f32 to vector<1x1xf32>
    %44 = arith.subf %43, %42 : vector<1x1xf32>
    %45 = vector.broadcast %44 : vector<1x1xf32> to vector<8x128xf32>
    %46 = arith.mulf %45, %21 : vector<8x128xf32>
    %47 = arith.addf %40, %46 : vector<8x128xf32>
    %cst_16 = arith.constant 2.000000e+00 : f32
    %48 = vector.broadcast %cst_16 : f32 to vector<8x1xf32>
    %49 = arith.mulf %48, %28 : vector<8x1xf32>
    %cst_17 = arith.constant 1.000000e+00 : f32
    %50 = vector.broadcast %cst_17 : f32 to vector<8x1xf32>
    %51 = arith.subf %50, %49 : vector<8x1xf32>
    %cst_18 = arith.constant 1.000000e+00 : f32
    %52 = vector.broadcast %cst_18 : f32 to vector<1x1xf32>
    %53 = arith.mulf %52, %6 : vector<1x1xf32>
    %54 = vector.broadcast %53 : vector<1x1xf32> to vector<8x1xf32>
    %55 = arith.mulf %54, %24 : vector<8x1xf32>
    %56 = arith.addf %51, %55 : vector<8x1xf32>
    %cst_19 = arith.constant 1.000000e-15 : f32
    %57 = vector.broadcast %cst_19 : f32 to vector<8x1xf32>
    %58 = arith.maximumf %56, %57 : vector<8x1xf32>
    %59 = vector.broadcast %58 : vector<8x1xf32> to vector<8x128xf32>
    %60 = arith.divf %47, %59 : vector<8x128xf32>
    %61 = arith.mulf %60, %60 : vector<8x128xf32>
    %cst_20 = arith.constant dense<0.000000e+00> : vector<8xf32>
    %62 = vector.multi_reduction <add>, %61, %cst_20 [1] : vector<8x128xf32> to vector<8xf32>
    %63 = vector.shape_cast %62 : vector<8xf32> to vector<8x1xf32>
    %cst_21 = arith.constant 1.000000e-15 : f32
    %64 = vector.broadcast %cst_21 : f32 to vector<8x1xf32>
    %65 = arith.maximumf %63, %64 : vector<8x1xf32>
    %66 = math.sqrt %65 : vector<8x1xf32>
    %cst_22 = arith.constant 1.000000e+00 : f32
    %67 = vector.broadcast %cst_22 : f32 to vector<8x1xf32>
    %68 = arith.mulf %67, %66 : vector<8x1xf32>
    %cst_23 = arith.constant -0.99999988 : f32
    %cst_24 = arith.constant 0.99999988 : f32
    %69 = vector.broadcast %cst_23 : f32 to vector<8x1xf32>
    %70 = arith.maximumf %69, %68 : vector<8x1xf32>
    %71 = vector.broadcast %cst_24 : f32 to vector<8x1xf32>
    %72 = arith.minimumf %71, %70 : vector<8x1xf32>
    %cst_25 = arith.constant 1.000000e+00 : f32
    %73 = vector.broadcast %cst_25 : f32 to vector<8x1xf32>
    %74 = arith.addf %73, %72 : vector<8x1xf32>
    %cst_26 = arith.constant 1.000000e+00 : f32
    %75 = vector.broadcast %cst_26 : f32 to vector<8x1xf32>
    %76 = arith.subf %75, %72 : vector<8x1xf32>
    %77 = arith.divf %74, %76 : vector<8x1xf32>
    %78 = math.log %77 : vector<8x1xf32>
    %cst_27 = arith.constant 5.000000e-01 : f32
    %79 = vector.broadcast %cst_27 : f32 to vector<8x1xf32>
    %80 = arith.mulf %79, %78 : vector<8x1xf32>
    %cst_28 = arith.constant 2.000000e+00 : f32
    %81 = vector.broadcast %cst_28 : f32 to vector<8x1xf32>
    %82 = arith.mulf %81, %80 : vector<8x1xf32>
    %83 = arith.mulf %82, %82 : vector<8x1xf32>
    %c0_29 = arith.constant 0 : index
    %c0_30 = arith.constant 0 : index
    %84 = vector.load %arg3[%c0_29, %c0_30] : memref<1x1xf32, #tpu.memory_space<vmem>>, vector<1x1xf32>
    %cst_31 = arith.constant dense<0.000000e+00> : vector<1xf32>
    %85 = vector.multi_reduction <add>, %83, %cst_31 [0] : vector<8x1xf32> to vector<1xf32>
    %86 = vector.shape_cast %85 : vector<1xf32> to vector<1x1xf32>
    %87 = arith.addf %84, %86 : vector<1x1xf32>
    %c0_32 = arith.constant 0 : index
    %c0_33 = arith.constant 0 : index
    %88 = vector.load %arg3[%c0_32, %c0_33] : memref<1x1xf32, #tpu.memory_space<vmem>>, vector<1x1xf32>
    tpu.vector_store %arg3[%c0_32, %c0_33], %87 {strides = array<i32>} : memref<1x1xf32, #tpu.memory_space<vmem>>, vector<1x1xf32>,
    return
  }
  func.func @transform_0(%arg0: i32) -> (i32, i32) {
    %c0_i32 = arith.constant 0 : i32
    %c0_i32_0 = arith.constant 0 : i32
    return %arg0, %c0_i32 : i32, i32
  }
  func.func @transform_1(%arg0: i32) -> (i32, i32) {
    %c0_i32 = arith.constant 0 : i32
    %c0_i32_0 = arith.constant 0 : i32
    %c0_i32_1 = arith.constant 0 : i32
    return %c0_i32, %c0_i32_0 : i32, i32
  }
  func.func @transform_2(%arg0: i32) -> (i32, i32) {
    %c0_i32 = arith.constant 0 : i32
    %c0_i32_0 = arith.constant 0 : i32
    %c0_i32_1 = arith.constant 0 : i32
    return %c0_i32, %c0_i32_0 : i32, i32
  }
}

module attributes {stable_mosaic.version = 11 : i64} {
  func.func @_midpoint_stats_kernel(%arg0: i32, %arg1: memref<8x128xf32, #tpu.memory_space<vmem>>, %arg2: memref<1x128xf32, #tpu.memory_space<vmem>>, %arg3: memref<1x1xf32, #tpu.memory_space<vmem>>) attributes {dimension_semantics = [#tpu.dimension_semantics<arbitrary>], iteration_bounds = array<i64: 1>, scalar_prefetch = 0 : i64, scratch_operands = 0 : i64, tpu.core_type = #tpu.core_type<tc>, window_params = [{transform_indices = @transform_0, window_bounds = array<i64: 8, 128>}, {pipeline_mode = #tpu.pipeline_mode<synchronous>, transform_indices = @transform_1, window_bounds = array<i64: 1, 128>}, {pipeline_mode = #tpu.pipeline_mode<synchronous>, transform_indices = @transform_2, window_bounds = array<i64: 1, 1>}]} {
    %c0_i32 = arith.constant 0 : i32
    %0 = arith.cmpi eq, %arg0, %c0_i32 : i32
    %1 = arith.extui %0 : i1 to i32
    %c0_i32_0 = arith.constant 0 : i32
    %2 = arith.cmpi ne, %1, %c0_i32_0 : i32
    scf.if %2 {
      %cst_21 = arith.constant 0.000000e+00 : f32
      %43 = vector.broadcast %cst_21 : f32 to vector<1x128xf32>
      %c0_22 = arith.constant 0 : index
      %c0_23 = arith.constant 0 : index
      %44 = vector.load %arg2[%c0_22, %c0_23] : memref<1x128xf32, #tpu.memory_space<vmem>>, vector<1x128xf32>
      tpu.vector_store %arg2[%c0_22, %c0_23], %43 {strides = array<i32>} : memref<1x128xf32, #tpu.memory_space<vmem>>, vector<1x128xf32>,
      %cst_24 = arith.constant 0.000000e+00 : f32
      %45 = vector.broadcast %cst_24 : f32 to vector<1x1xf32>
      %c0_25 = arith.constant 0 : index
      %c0_26 = arith.constant 0 : index
      %46 = vector.load %arg3[%c0_25, %c0_26] : memref<1x1xf32, #tpu.memory_space<vmem>>, vector<1x1xf32>
      tpu.vector_store %arg3[%c0_25, %c0_26], %45 {strides = array<i32>} : memref<1x1xf32, #tpu.memory_space<vmem>>, vector<1x1xf32>,
    } else {
    }
    %c0 = arith.constant 0 : index
    %c0_1 = arith.constant 0 : index
    %3 = vector.load %arg1[%c0, %c0_1] : memref<8x128xf32, #tpu.memory_space<vmem>>, vector<8x128xf32>
    %4 = arith.mulf %3, %3 : vector<8x128xf32>
    %cst = arith.constant dense<0.000000e+00> : vector<8xf32>
    %5 = vector.multi_reduction <add>, %4, %cst [1] : vector<8x128xf32> to vector<8xf32>
    %6 = vector.shape_cast %5 : vector<8xf32> to vector<8x1xf32>
    %cst_2 = arith.constant 1.000000e-15 : f32
    %7 = vector.broadcast %cst_2 : f32 to vector<8x1xf32>
    %8 = arith.maximumf %6, %7 : vector<8x1xf32>
    %9 = math.sqrt %8 : vector<8x1xf32>
    %cst_3 = arith.constant 1.000000e+00 : f32
    %10 = vector.broadcast %cst_3 : f32 to vector<8x1xf32>
    %11 = arith.mulf %10, %9 : vector<8x1xf32>
    %12 = math.tanh %11 : vector<8x1xf32>
    %cst_4 = arith.constant 1.000000e+00 : f32
    %13 = vector.broadcast %cst_4 : f32 to vector<8x1xf32>
    %14 = arith.mulf %13, %9 : vector<8x1xf32>
    %15 = arith.divf %12, %14 : vector<8x1xf32>
    %16 = vector.broadcast %15 : vector<8x1xf32> to vector<8x128xf32>
    %17 = arith.mulf %16, %3 : vector<8x128xf32>
    %18 = arith.mulf %12, %12 : vector<8x1xf32>
    %cst_5 = arith.constant 1.000000e+00 : f32
    %19 = vector.broadcast %cst_5 : f32 to vector<8x1xf32>
    %20 = arith.divf %18, %19 : vector<8x1xf32>
    %cst_6 = arith.constant 1.000000e+00 : f32
    %21 = vector.broadcast %cst_6 : f32 to vector<8x1xf32>
    %22 = arith.mulf %21, %20 : vector<8x1xf32>
    %cst_7 = arith.constant 1.000000e+00 : f32
    %23 = vector.broadcast %cst_7 : f32 to vector<8x1xf32>
    %24 = arith.subf %23, %22 : vector<8x1xf32>
    %cst_8 = arith.constant 1.000000e-15 : f32
    %25 = vector.broadcast %cst_8 : f32 to vector<8x1xf32>
    %26 = arith.maximumf %24, %25 : vector<8x1xf32>
    %cst_9 = arith.constant 2.000000e+00 : f32
    %27 = vector.broadcast %cst_9 : f32 to vector<8x1xf32>
    %28 = arith.divf %27, %26 : vector<8x1xf32>
    %cst_10 = arith.constant 1.000000e+00 : f32
    %29 = vector.broadcast %cst_10 : f32 to vector<8x1xf32>
    %30 = arith.subf %28, %29 : vector<8x1xf32>
    %c0_11 = arith.constant 0 : index
    %c0_12 = arith.constant 0 : index
    %31 = vector.load %arg2[%c0_11, %c0_12] : memref<1x128xf32, #tpu.memory_space<vmem>>, vector<1x128xf32>
    %32 = vector.broadcast %28 : vector<8x1xf32> to vector<8x128xf32>
    %33 = arith.mulf %32, %17 : vector<8x128xf32>
    %cst_13 = arith.constant dense<0.000000e+00> : vector<128xf32>
    %34 = vector.multi_reduction <add>, %33, %cst_13 [0] : vector<8x128xf32> to vector<128xf32>
    %35 = vector.shape_cast %34 : vector<128xf32> to vector<1x128xf32>
    %36 = arith.addf %31, %35 : vector<1x128xf32>
    %c0_14 = arith.constant 0 : index
    %c0_15 = arith.constant 0 : index
    %37 = vector.load %arg2[%c0_14, %c0_15] : memref<1x128xf32, #tpu.memory_space<vmem>>, vector<1x128xf32>
    tpu.vector_store %arg2[%c0_14, %c0_15], %36 {strides = array<i32>} : memref<1x128xf32, #tpu.memory_space<vmem>>, vector<1x128xf32>,
    %c0_16 = arith.constant 0 : index
    %c0_17 = arith.constant 0 : index
    %38 = vector.load %arg3[%c0_16, %c0_17] : memref<1x1xf32, #tpu.memory_space<vmem>>, vector<1x1xf32>
    %cst_18 = arith.constant dense<0.000000e+00> : vector<1xf32>
    %39 = vector.multi_reduction <add>, %30, %cst_18 [0] : vector<8x1xf32> to vector<1xf32>
    %40 = vector.shape_cast %39 : vector<1xf32> to vector<1x1xf32>
    %41 = arith.addf %38, %40 : vector<1x1xf32>
    %c0_19 = arith.constant 0 : index
    %c0_20 = arith.constant 0 : index
    %42 = vector.load %arg3[%c0_19, %c0_20] : memref<1x1xf32, #tpu.memory_space<vmem>>, vector<1x1xf32>
    tpu.vector_store %arg3[%c0_19, %c0_20], %41 {strides = array<i32>} : memref<1x1xf32, #tpu.memory_space<vmem>>, vector<1x1xf32>,
    return
  }
  func.func @transform_0(%arg0: i32) -> (i32, i32) {
    %c0_i32 = arith.constant 0 : i32
    %c0_i32_0 = arith.constant 0 : i32
    return %arg0, %c0_i32 : i32, i32
  }
  func.func @transform_1(%arg0: i32) -> (i32, i32) {
    %c0_i32 = arith.constant 0 : i32
    %c0_i32_0 = arith.constant 0 : i32
    %c0_i32_1 = arith.constant 0 : i32
    return %c0_i32, %c0_i32_0 : i32, i32
  }
  func.func @transform_2(%arg0: i32) -> (i32, i32) {
    %c0_i32 = arith.constant 0 : i32
    %c0_i32_0 = arith.constant 0 : i32
    %c0_i32_1 = arith.constant 0 : i32
    return %c0_i32, %c0_i32_0 : i32, i32
  }
}

module attributes {stable_mosaic.version = 11 : i64} {
  func.func @_transform_kernel(%arg0: i32, %arg1: memref<8x128xf32, #tpu.memory_space<vmem>>, %arg2: memref<1x128xf32, #tpu.memory_space<vmem>>, %arg3: memref<1x128xf32, #tpu.memory_space<vmem>>, %arg4: memref<1x1xf32, #tpu.memory_space<vmem>>, %arg5: memref<8x128xf32, #tpu.memory_space<vmem>>) attributes {dimension_semantics = [#tpu.dimension_semantics<parallel>], iteration_bounds = array<i64: 1>, scalar_prefetch = 0 : i64, scratch_operands = 0 : i64, tpu.core_type = #tpu.core_type<tc>, window_params = [{transform_indices = @transform_0, window_bounds = array<i64: 8, 128>}, {pipeline_mode = #tpu.pipeline_mode<synchronous>, transform_indices = @transform_1, window_bounds = array<i64: 1, 128>}, {pipeline_mode = #tpu.pipeline_mode<synchronous>, transform_indices = @transform_2, window_bounds = array<i64: 1, 128>}, {pipeline_mode = #tpu.pipeline_mode<synchronous>, transform_indices = @transform_3, window_bounds = array<i64: 1, 1>}, {transform_indices = @transform_4, window_bounds = array<i64: 8, 128>}]} {
    %c0 = arith.constant 0 : index
    %c0_0 = arith.constant 0 : index
    %0 = vector.load %arg2[%c0, %c0_0] : memref<1x128xf32, #tpu.memory_space<vmem>>, vector<1x128xf32>
    %c0_1 = arith.constant 0 : index
    %c0_2 = arith.constant 0 : index
    %1 = vector.load %arg3[%c0_1, %c0_2] : memref<1x128xf32, #tpu.memory_space<vmem>>, vector<1x128xf32>
    %2 = arith.mulf %0, %0 : vector<1x128xf32>
    %cst = arith.constant dense<0.000000e+00> : vector<1xf32>
    %3 = vector.multi_reduction <add>, %2, %cst [1] : vector<1x128xf32> to vector<1xf32>
    %4 = vector.shape_cast %3 : vector<1xf32> to vector<1x1xf32>
    %5 = arith.mulf %1, %1 : vector<1x128xf32>
    %cst_3 = arith.constant dense<0.000000e+00> : vector<1xf32>
    %6 = vector.multi_reduction <add>, %5, %cst_3 [1] : vector<1x128xf32> to vector<1xf32>
    %7 = vector.shape_cast %6 : vector<1xf32> to vector<1x1xf32>
    %8 = arith.mulf %0, %1 : vector<1x128xf32>
    %cst_4 = arith.constant dense<0.000000e+00> : vector<1xf32>
    %9 = vector.multi_reduction <add>, %8, %cst_4 [1] : vector<1x128xf32> to vector<1xf32>
    %10 = vector.shape_cast %9 : vector<1xf32> to vector<1x1xf32>
    %cst_5 = arith.constant 1.000000e+00 : f32
    %11 = vector.broadcast %cst_5 : f32 to vector<1x1xf32>
    %12 = arith.mulf %11, %4 : vector<1x1xf32>
    %cst_6 = arith.constant 1.000000e+00 : f32
    %13 = vector.broadcast %cst_6 : f32 to vector<1x1xf32>
    %14 = arith.subf %13, %12 : vector<1x1xf32>
    %cst_7 = arith.constant 1.000000e-15 : f32
    %15 = vector.broadcast %cst_7 : f32 to vector<1x1xf32>
    %16 = arith.maximumf %14, %15 : vector<1x1xf32>
    %cst_8 = arith.constant 2.000000e+00 : f32
    %17 = vector.broadcast %cst_8 : f32 to vector<1x1xf32>
    %18 = arith.divf %17, %16 : vector<1x1xf32>
    %cst_9 = arith.constant 1.000000e+00 : f32
    %19 = vector.broadcast %cst_9 : f32 to vector<1x1xf32>
    %20 = arith.mulf %19, %7 : vector<1x1xf32>
    %cst_10 = arith.constant 1.000000e+00 : f32
    %21 = vector.broadcast %cst_10 : f32 to vector<1x1xf32>
    %22 = arith.subf %21, %20 : vector<1x1xf32>
    %cst_11 = arith.constant 1.000000e-15 : f32
    %23 = vector.broadcast %cst_11 : f32 to vector<1x1xf32>
    %24 = arith.maximumf %22, %23 : vector<1x1xf32>
    %cst_12 = arith.constant 2.000000e+00 : f32
    %25 = vector.broadcast %cst_12 : f32 to vector<1x1xf32>
    %26 = arith.divf %25, %24 : vector<1x1xf32>
    %c0_13 = arith.constant 0 : index
    %c0_14 = arith.constant 0 : index
    %27 = vector.load %arg4[%c0_13, %c0_14] : memref<1x1xf32, #tpu.memory_space<vmem>>, vector<1x1xf32>
    %28 = arith.divf %18, %26 : vector<1x1xf32>
    %29 = arith.mulf %27, %28 : vector<1x1xf32>
    %cst_15 = arith.constant 0.000000e+00 : f32
    %30 = vector.broadcast %cst_15 : f32 to vector<1x1xf32>
    %31 = arith.subf %30, %10 : vector<1x1xf32>
    %cst_16 = arith.constant 2.000000e+00 : f32
    %32 = vector.broadcast %cst_16 : f32 to vector<1x1xf32>
    %33 = arith.mulf %32, %31 : vector<1x1xf32>
    %cst_17 = arith.constant 1.000000e+00 : f32
    %34 = vector.broadcast %cst_17 : f32 to vector<1x1xf32>
    %35 = arith.addf %34, %33 : vector<1x1xf32>
    %cst_18 = arith.constant 1.000000e+00 : f32
    %36 = vector.broadcast %cst_18 : f32 to vector<1x1xf32>
    %37 = arith.mulf %36, %7 : vector<1x1xf32>
    %38 = arith.mulf %37, %4 : vector<1x1xf32>
    %39 = arith.addf %35, %38 : vector<1x1xf32>
    %cst_19 = arith.constant 1.000000e-15 : f32
    %40 = vector.broadcast %cst_19 : f32 to vector<1x1xf32>
    %41 = arith.maximumf %39, %40 : vector<1x1xf32>
    %c0_20 = arith.constant 0 : index
    %c0_21 = arith.constant 0 : index
    %42 = vector.load %arg1[%c0_20, %c0_21] : memref<8x128xf32, #tpu.memory_space<vmem>>, vector<8x128xf32>
    %43 = arith.mulf %42, %42 : vector<8x128xf32>
    %cst_22 = arith.constant dense<0.000000e+00> : vector<8xf32>
    %44 = vector.multi_reduction <add>, %43, %cst_22 [1] : vector<8x128xf32> to vector<8xf32>
    %45 = vector.shape_cast %44 : vector<8xf32> to vector<8x1xf32>
    %cst_23 = arith.constant 1.000000e-15 : f32
    %46 = vector.broadcast %cst_23 : f32 to vector<8x1xf32>
    %47 = arith.maximumf %45, %46 : vector<8x1xf32>
    %48 = math.sqrt %47 : vector<8x1xf32>
    %cst_24 = arith.constant 1.000000e+00 : f32
    %49 = vector.broadcast %cst_24 : f32 to vector<8x1xf32>
    %50 = arith.mulf %49, %48 : vector<8x1xf32>
    %51 = math.tanh %50 : vector<8x1xf32>
    %cst_25 = arith.constant 1.000000e+00 : f32
    %52 = vector.broadcast %cst_25 : f32 to vector<8x1xf32>
    %53 = arith.mulf %52, %48 : vector<8x1xf32>
    %54 = arith.divf %51, %53 : vector<8x1xf32>
    %55 = vector.broadcast %54 : vector<8x1xf32> to vector<8x128xf32>
    %56 = arith.mulf %55, %42 : vector<8x128xf32>
    %57 = arith.mulf %51, %51 : vector<8x1xf32>
    %cst_26 = arith.constant 1.000000e+00 : f32
    %58 = vector.broadcast %cst_26 : f32 to vector<8x1xf32>
    %59 = arith.divf %57, %58 : vector<8x1xf32>
    %60 = vector.broadcast %0 : vector<1x128xf32> to vector<8x128xf32>
    %61 = arith.mulf %60, %56 : vector<8x128xf32>
    %cst_27 = arith.constant dense<0.000000e+00> : vector<8xf32>
    %62 = vector.multi_reduction <add>, %61, %cst_27 [1] : vector<8x128xf32> to vector<8xf32>
    %63 = vector.shape_cast %62 : vector<8xf32> to vector<8x1xf32>
    %cst_28 = arith.constant 2.000000e+00 : f32
    %64 = vector.broadcast %cst_28 : f32 to vector<8x1xf32>
    %65 = arith.mulf %64, %63 : vector<8x1xf32>
    %cst_29 = arith.constant 1.000000e+00 : f32
    %66 = vector.broadcast %cst_29 : f32 to vector<8x1xf32>
    %67 = arith.subf %66, %65 : vector<8x1xf32>
    %cst_30 = arith.constant 1.000000e+00 : f32
    %68 = vector.broadcast %cst_30 : f32 to vector<8x1xf32>
    %69 = arith.mulf %68, %59 : vector<8x1xf32>
    %70 = arith.addf %67, %69 : vector<8x1xf32>
    %cst_31 = arith.constant 0.000000e+00 : f32
    %71 = vector.broadcast %cst_31 : f32 to vector<1x128xf32>
    %72 = arith.subf %71, %0 : vector<1x128xf32>
    %73 = vector.broadcast %70 : vector<8x1xf32> to vector<8x128xf32>
    %74 = vector.broadcast %72 : vector<1x128xf32> to vector<8x128xf32>
    %75 = arith.mulf %73, %74 : vector<8x128xf32>
    %cst_32 = arith.constant 1.000000e+00 : f32
    %76 = vector.broadcast %cst_32 : f32 to vector<1x1xf32>
    %77 = arith.mulf %76, %4 : vector<1x1xf32>
    %cst_33 = arith.constant 1.000000e+00 : f32
    %78 = vector.broadcast %cst_33 : f32 to vector<1x1xf32>
    %79 = arith.subf %78, %77 : vector<1x1xf32>
    %80 = vector.broadcast %79 : vector<1x1xf32> to vector<8x128xf32>
    %81 = arith.mulf %80, %56 : vector<8x128xf32>
    %82 = arith.addf %75, %81 : vector<8x128xf32>
    %cst_34 = arith.constant 2.000000e+00 : f32
    %83 = vector.broadcast %cst_34 : f32 to vector<8x1xf32>
    %84 = arith.mulf %83, %63 : vector<8x1xf32>
    %cst_35 = arith.constant 1.000000e+00 : f32
    %85 = vector.broadcast %cst_35 : f32 to vector<8x1xf32>
    %86 = arith.subf %85, %84 : vector<8x1xf32>
    %cst_36 = arith.constant 1.000000e+00 : f32
    %87 = vector.broadcast %cst_36 : f32 to vector<1x1xf32>
    %88 = arith.mulf %87, %4 : vector<1x1xf32>
    %89 = vector.broadcast %88 : vector<1x1xf32> to vector<8x1xf32>
    %90 = arith.mulf %89, %59 : vector<8x1xf32>
    %91 = arith.addf %86, %90 : vector<8x1xf32>
    %cst_37 = arith.constant 1.000000e-15 : f32
    %92 = vector.broadcast %cst_37 : f32 to vector<8x1xf32>
    %93 = arith.maximumf %91, %92 : vector<8x1xf32>
    %94 = vector.broadcast %93 : vector<8x1xf32> to vector<8x128xf32>
    %95 = arith.divf %82, %94 : vector<8x128xf32>
    %96 = arith.mulf %95, %95 : vector<8x128xf32>
    %cst_38 = arith.constant dense<0.000000e+00> : vector<8xf32>
    %97 = vector.multi_reduction <add>, %96, %cst_38 [1] : vector<8x128xf32> to vector<8xf32>
    %98 = vector.shape_cast %97 : vector<8xf32> to vector<8x1xf32>
    %cst_39 = arith.constant 1.000000e-15 : f32
    %99 = vector.broadcast %cst_39 : f32 to vector<8x1xf32>
    %100 = arith.maximumf %98, %99 : vector<8x1xf32>
    %101 = math.sqrt %100 : vector<8x1xf32>
    %cst_40 = arith.constant 1.000000e+00 : f32
    %102 = vector.broadcast %cst_40 : f32 to vector<1x1xf32>
    %103 = arith.mulf %102, %18 : vector<1x1xf32>
    %cst_41 = arith.constant 2.000000e+00 : f32
    %104 = vector.broadcast %cst_41 : f32 to vector<1x1xf32>
    %105 = arith.divf %104, %103 : vector<1x1xf32>
    %cst_42 = arith.constant 1.000000e+00 : f32
    %106 = vector.broadcast %cst_42 : f32 to vector<8x1xf32>
    %107 = arith.mulf %106, %101 : vector<8x1xf32>
    %cst_43 = arith.constant -0.99999988 : f32
    %cst_44 = arith.constant 0.99999988 : f32
    %108 = vector.broadcast %cst_43 : f32 to vector<8x1xf32>
    %109 = arith.maximumf %108, %107 : vector<8x1xf32>
    %110 = vector.broadcast %cst_44 : f32 to vector<8x1xf32>
    %111 = arith.minimumf %110, %109 : vector<8x1xf32>
    %cst_45 = arith.constant 1.000000e+00 : f32
    %112 = vector.broadcast %cst_45 : f32 to vector<8x1xf32>
    %113 = arith.addf %112, %111 : vector<8x1xf32>
    %cst_46 = arith.constant 1.000000e+00 : f32
    %114 = vector.broadcast %cst_46 : f32 to vector<8x1xf32>
    %115 = arith.subf %114, %111 : vector<8x1xf32>
    %116 = arith.divf %113, %115 : vector<8x1xf32>
    %117 = math.log %116 : vector<8x1xf32>
    %cst_47 = arith.constant 5.000000e-01 : f32
    %118 = vector.broadcast %cst_47 : f32 to vector<8x1xf32>
    %119 = arith.mulf %118, %117 : vector<8x1xf32>
    %120 = vector.broadcast %105 : vector<1x1xf32> to vector<8x1xf32>
    %121 = arith.mulf %120, %119 : vector<8x1xf32>
    %122 = arith.divf %121, %101 : vector<8x1xf32>
    %123 = vector.broadcast %122 : vector<8x1xf32> to vector<8x128xf32>
    %124 = arith.mulf %123, %95 : vector<8x128xf32>
    %125 = vector.broadcast %1 : vector<1x128xf32> to vector<8x128xf32>
    %126 = arith.mulf %125, %124 : vector<8x128xf32>
    %cst_48 = arith.constant dense<0.000000e+00> : vector<8xf32>
    %127 = vector.multi_reduction <add>, %126, %cst_48 [1] : vector<8x128xf32> to vector<8xf32>
    %128 = vector.shape_cast %127 : vector<8xf32> to vector<8x1xf32>
    %129 = vector.broadcast %0 : vector<1x128xf32> to vector<8x128xf32>
    %130 = arith.mulf %129, %124 : vector<8x128xf32>
    %cst_49 = arith.constant dense<0.000000e+00> : vector<8xf32>
    %131 = vector.multi_reduction <add>, %130, %cst_49 [1] : vector<8x128xf32> to vector<8xf32>
    %132 = vector.shape_cast %131 : vector<8xf32> to vector<8x1xf32>
    %cst_50 = arith.constant 0.000000e+00 : f32
    %133 = vector.broadcast %cst_50 : f32 to vector<8x1xf32>
    %134 = arith.subf %133, %132 : vector<8x1xf32>
    %cst_51 = arith.constant -1.000000e+00 : f32
    %135 = vector.broadcast %cst_51 : f32 to vector<8x1xf32>
    %136 = arith.mulf %135, %128 : vector<8x1xf32>
    %137 = vector.broadcast %4 : vector<1x1xf32> to vector<8x1xf32>
    %138 = arith.mulf %136, %137 : vector<8x1xf32>
    %cst_52 = arith.constant 1.000000e+00 : f32
    %139 = vector.broadcast %cst_52 : f32 to vector<8x1xf32>
    %140 = arith.mulf %139, %134 : vector<8x1xf32>
    %141 = arith.subf %138, %140 : vector<8x1xf32>
    %cst_53 = arith.constant 2.000000e+00 : f32
    %142 = vector.broadcast %cst_53 : f32 to vector<1x1xf32>
    %143 = arith.mulf %142, %31 : vector<1x1xf32>
    %144 = vector.broadcast %143 : vector<1x1xf32> to vector<8x1xf32>
    %145 = arith.mulf %144, %134 : vector<8x1xf32>
    %146 = arith.addf %141, %145 : vector<8x1xf32>
    %cst_54 = arith.constant -1.000000e+00 : f32
    %147 = vector.broadcast %cst_54 : f32 to vector<8x1xf32>
    %148 = arith.mulf %147, %134 : vector<8x1xf32>
    %149 = vector.broadcast %7 : vector<1x1xf32> to vector<8x1xf32>
    %150 = arith.mulf %148, %149 : vector<8x1xf32>
    %cst_55 = arith.constant 1.000000e+00 : f32
    %151 = vector.broadcast %cst_55 : f32 to vector<8x1xf32>
    %152 = arith.mulf %151, %128 : vector<8x1xf32>
    %153 = arith.addf %150, %152 : vector<8x1xf32>
    %154 = vector.broadcast %146 : vector<8x1xf32> to vector<8x128xf32>
    %155 = vector.broadcast %1 : vector<1x128xf32> to vector<8x128xf32>
    %156 = arith.mulf %154, %155 : vector<8x128xf32>
    %cst_56 = arith.constant 0.000000e+00 : f32
    %157 = vector.broadcast %cst_56 : f32 to vector<1x128xf32>
    %158 = arith.subf %157, %0 : vector<1x128xf32>
    %159 = vector.broadcast %153 : vector<8x1xf32> to vector<8x128xf32>
    %160 = vector.broadcast %158 : vector<1x128xf32> to vector<8x128xf32>
    %161 = arith.mulf %159, %160 : vector<8x128xf32>
    %162 = arith.addf %156, %161 : vector<8x128xf32>
    %cst_57 = arith.constant 2.000000e+00 : f32
    %163 = vector.broadcast %cst_57 : f32 to vector<8x128xf32>
    %164 = arith.mulf %163, %162 : vector<8x128xf32>
    %165 = vector.broadcast %41 : vector<1x1xf32> to vector<8x128xf32>
    %166 = arith.divf %164, %165 : vector<8x128xf32>
    %167 = arith.addf %124, %166 : vector<8x128xf32>
    %168 = vector.broadcast %29 : vector<1x1xf32> to vector<8x128xf32>
    %169 = arith.mulf %168, %167 : vector<8x128xf32>
    %170 = arith.mulf %169, %169 : vector<8x128xf32>
    %cst_58 = arith.constant dense<0.000000e+00> : vector<8xf32>
    %171 = vector.multi_reduction <add>, %170, %cst_58 [1] : vector<8x128xf32> to vector<8xf32>
    %172 = vector.shape_cast %171 : vector<8xf32> to vector<8x1xf32>
    %cst_59 = arith.constant 1.000000e-15 : f32
    %173 = vector.broadcast %cst_59 : f32 to vector<8x1xf32>
    %174 = arith.maximumf %172, %173 : vector<8x1xf32>
    %175 = math.sqrt %174 : vector<8x1xf32>
    %cst_60 = arith.constant 1.000000e+00 : f32
    %176 = vector.broadcast %cst_60 : f32 to vector<1x1xf32>
    %177 = arith.mulf %176, %26 : vector<1x1xf32>
    %178 = vector.broadcast %177 : vector<1x1xf32> to vector<8x1xf32>
    %179 = arith.mulf %178, %175 : vector<8x1xf32>
    %cst_61 = arith.constant 2.000000e+00 : f32
    %180 = vector.broadcast %cst_61 : f32 to vector<8x1xf32>
    %181 = arith.divf %179, %180 : vector<8x1xf32>
    %182 = math.tanh %181 : vector<8x1xf32>
    %cst_62 = arith.constant 1.000000e+00 : f32
    %183 = vector.broadcast %cst_62 : f32 to vector<8x1xf32>
    %184 = arith.mulf %183, %175 : vector<8x1xf32>
    %185 = arith.divf %182, %184 : vector<8x1xf32>
    %186 = vector.broadcast %185 : vector<8x1xf32> to vector<8x128xf32>
    %187 = arith.mulf %186, %169 : vector<8x128xf32>
    %188 = arith.mulf %182, %182 : vector<8x1xf32>
    %cst_63 = arith.constant 1.000000e+00 : f32
    %189 = vector.broadcast %cst_63 : f32 to vector<8x1xf32>
    %190 = arith.divf %188, %189 : vector<8x1xf32>
    %191 = vector.broadcast %1 : vector<1x128xf32> to vector<8x128xf32>
    %192 = arith.mulf %191, %187 : vector<8x128xf32>
    %cst_64 = arith.constant dense<0.000000e+00> : vector<8xf32>
    %193 = vector.multi_reduction <add>, %192, %cst_64 [1] : vector<8x128xf32> to vector<8xf32>
    %194 = vector.shape_cast %193 : vector<8xf32> to vector<8x1xf32>
    %cst_65 = arith.constant 2.000000e+00 : f32
    %195 = vector.broadcast %cst_65 : f32 to vector<8x1xf32>
    %196 = arith.mulf %195, %194 : vector<8x1xf32>
    %cst_66 = arith.constant 1.000000e+00 : f32
    %197 = vector.broadcast %cst_66 : f32 to vector<8x1xf32>
    %198 = arith.addf %197, %196 : vector<8x1xf32>
    %cst_67 = arith.constant 1.000000e+00 : f32
    %199 = vector.broadcast %cst_67 : f32 to vector<8x1xf32>
    %200 = arith.mulf %199, %190 : vector<8x1xf32>
    %201 = arith.addf %198, %200 : vector<8x1xf32>
    %202 = vector.broadcast %201 : vector<8x1xf32> to vector<8x128xf32>
    %203 = vector.broadcast %1 : vector<1x128xf32> to vector<8x128xf32>
    %204 = arith.mulf %202, %203 : vector<8x128xf32>
    %cst_68 = arith.constant 1.000000e+00 : f32
    %205 = vector.broadcast %cst_68 : f32 to vector<1x1xf32>
    %206 = arith.mulf %205, %7 : vector<1x1xf32>
    %cst_69 = arith.constant 1.000000e+00 : f32
    %207 = vector.broadcast %cst_69 : f32 to vector<1x1xf32>
    %208 = arith.subf %207, %206 : vector<1x1xf32>
    %209 = vector.broadcast %208 : vector<1x1xf32> to vector<8x128xf32>
    %210 = arith.mulf %209, %187 : vector<8x128xf32>
    %211 = arith.addf %204, %210 : vector<8x128xf32>
    %cst_70 = arith.constant 2.000000e+00 : f32
    %212 = vector.broadcast %cst_70 : f32 to vector<8x1xf32>
    %213 = arith.mulf %212, %194 : vector<8x1xf32>
    %cst_71 = arith.constant 1.000000e+00 : f32
    %214 = vector.broadcast %cst_71 : f32 to vector<8x1xf32>
    %215 = arith.addf %214, %213 : vector<8x1xf32>
    %cst_72 = arith.constant 1.000000e+00 : f32
    %216 = vector.broadcast %cst_72 : f32 to vector<1x1xf32>
    %217 = arith.mulf %216, %7 : vector<1x1xf32>
    %218 = vector.broadcast %217 : vector<1x1xf32> to vector<8x1xf32>
    %219 = arith.mulf %218, %190 : vector<8x1xf32>
    %220 = arith.addf %215, %219 : vector<8x1xf32>
    %cst_73 = arith.constant 1.000000e-15 : f32
    %221 = vector.broadcast %cst_73 : f32 to vector<8x1xf32>
    %222 = arith.maximumf %220, %221 : vector<8x1xf32>
    %223 = vector.broadcast %222 : vector<8x1xf32> to vector<8x128xf32>
    %224 = arith.divf %211, %223 : vector<8x128xf32>
    %225 = arith.mulf %224, %224 : vector<8x128xf32>
    %cst_74 = arith.constant dense<0.000000e+00> : vector<8xf32>
    %226 = vector.multi_reduction <add>, %225, %cst_74 [1] : vector<8x128xf32> to vector<8xf32>
    %227 = vector.shape_cast %226 : vector<8xf32> to vector<8x1xf32>
    %cst_75 = arith.constant 1.000000e-15 : f32
    %228 = vector.broadcast %cst_75 : f32 to vector<8x1xf32>
    %229 = arith.maximumf %227, %228 : vector<8x1xf32>
    %230 = math.sqrt %229 : vector<8x1xf32>
    %cst_76 = arith.constant 1.000000e+00 : f32
    %231 = vector.broadcast %cst_76 : f32 to vector<8x1xf32>
    %232 = arith.mulf %231, %230 : vector<8x1xf32>
    %cst_77 = arith.constant -0.99999988 : f32
    %cst_78 = arith.constant 0.99999988 : f32
    %233 = vector.broadcast %cst_77 : f32 to vector<8x1xf32>
    %234 = arith.maximumf %233, %232 : vector<8x1xf32>
    %235 = vector.broadcast %cst_78 : f32 to vector<8x1xf32>
    %236 = arith.minimumf %235, %234 : vector<8x1xf32>
    %cst_79 = arith.constant 1.000000e+00 : f32
    %237 = vector.broadcast %cst_79 : f32 to vector<8x1xf32>
    %238 = arith.addf %237, %236 : vector<8x1xf32>
    %cst_80 = arith.constant 1.000000e+00 : f32
    %239 = vector.broadcast %cst_80 : f32 to vector<8x1xf32>
    %240 = arith.subf %239, %236 : vector<8x1xf32>
    %241 = arith.divf %238, %240 : vector<8x1xf32>
    %242 = math.log %241 : vector<8x1xf32>
    %cst_81 = arith.constant 5.000000e-01 : f32
    %243 = vector.broadcast %cst_81 : f32 to vector<8x1xf32>
    %244 = arith.mulf %243, %242 : vector<8x1xf32>
    %cst_82 = arith.constant 1.000000e+00 : f32
    %245 = vector.broadcast %cst_82 : f32 to vector<8x1xf32>
    %246 = arith.mulf %245, %230 : vector<8x1xf32>
    %247 = arith.divf %244, %246 : vector<8x1xf32>
    %248 = vector.broadcast %247 : vector<8x1xf32> to vector<8x128xf32>
    %249 = arith.mulf %248, %224 : vector<8x128xf32>
    %c0_83 = arith.constant 0 : index
    %c0_84 = arith.constant 0 : index
    %250 = vector.load %arg5[%c0_83, %c0_84] : memref<8x128xf32, #tpu.memory_space<vmem>>, vector<8x128xf32>
    tpu.vector_store %arg5[%c0_83, %c0_84], %249 {strides = array<i32>} : memref<8x128xf32, #tpu.memory_space<vmem>>, vector<8x128xf32>,
    return
  }
  func.func @transform_0(%arg0: i32) -> (i32, i32) {
    %c0_i32 = arith.constant 0 : i32
    %c0_i32_0 = arith.constant 0 : i32
    return %arg0, %c0_i32 : i32, i32
  }
  func.func @transform_1(%arg0: i32) -> (i32, i32) {
    %c0_i32 = arith.constant 0 : i32
    %c0_i32_0 = arith.constant 0 : i32
    %c0_i32_1 = arith.constant 0 : i32
    return %c0_i32, %c0_i32_0 : i32, i32
  }
  func.func @transform_2(%arg0: i32) -> (i32, i32) {
    %c0_i32 = arith.constant 0 : i32
    %c0_i32_0 = arith.constant 0 : i32
    %c0_i32_1 = arith.constant 0 : i32
    return %c0_i32, %c0_i32_0 : i32, i32
  }
  func.func @transform_3(%arg0: i32) -> (i32, i32) {
    %c0_i32 = arith.constant 0 : i32
    %c0_i32_0 = arith.constant 0 : i32
    %c0_i32_1 = arith.constant 0 : i32
    return %c0_i32, %c0_i32_0 : i32, i32
  }
  func.func @transform_4(%arg0: i32) -> (i32, i32) {
    %c0_i32 = arith.constant 0 : i32
    %c0_i32_0 = arith.constant 0 : i32
    return %arg0, %c0_i32 : i32, i32
  }
}

</mosaic_0001>

<bundles_post_ra>
// kernel: poincare_batch_norm.4
= control target key start
LH: loop header
LB: loop body
LE: loop exit
PB: predicated region body
PF: predicated region fallthrough
CT: control target
= control target key end

     0   :  { %s237_s0 = inlined_call_operand.vmem [shape: f32[8,128], index: 0, kind: input, shape index: {}]   ;;  %s238_s1 = inlined_call_operand.vmem [shape: f32[1,128], index: 1, kind: input, shape index: {}]   ;;  %s239_s2 = inlined_call_operand.hbm [shape: f32[1,1], index: 2, kind: output, shape index: {}]  }
   0x1   :  { %v24_v0 = vld [vmem:[%s237_s0] sm:$0xff] }
   0x2   :  { %7 = vsyncpa [#allocation3], 0  ;;  %v25_v1 = vmul.f32 %v24_v0, %v24_v0  ;;  %v18_v2 = vld [vmem:[%s238_s1] sm:$0x1]  ;;  %vm20_vm0 = vcmask 1040384   ;;  %vm16_vm11 = vcmask 0  }
   0x3   :  { %v19_v3 = vmul.f32 %v18_v2, %v18_v2  ;;  %v165_v29 = vld [vmem:[%s238_s1] ss:$0 sm:$0xff]  ;;  %v68_v33 = vsub.f32 0.0, %v18_v2  ;;  %v206_v61 = vmov 0.0   ;;  %s207_s1 = smov [#allocation2]   ;;  %s153_s17 = sshll.u32 %s239_s2, 4  ;;  %s154_s17 = int_to_ptr.hbm [resolvable:$true] %s153_s17 }
   0x4   :  { %26 = vadd.xlane.f32.xlu0 %v25_v1  ;;  %17 = vst.msk [vmem:[#allocation2] sm:$0x1] %vm16_vm11, %v206_v61  ;;  %s151_s14 = sshll.u32 %s207_s1, 4  ;;  %s152_s14 = int_to_ptr.vmem [resolvable:$true] %s151_s14 }
   0x5   :  { %v21_v4 = vsel %vm20_vm0, %v19_v3, 0.0  ;;  %v70_v41 = vperm.slane %v68_v33, 0 }
   0xc   :  { %22 = vadd.xlane.f32.xlu0 %v21_v4 }
  0x77   :  { %v27_v5 = vpop.xlane.xlu0 %26 }
  0x78   :  { %v28_v6 = vmax.f32 %v27_v5, 1e-15 }
  0x7a   :  { %166 = vrsqrt.f32 %v28_v6  ;;  %vm36_vm1 = vcmp.eq.f32.partialorder %v28_v6, inf  ;;  %v39_v14 = vand.u32 2147483648, %v28_v6  ;;  %vm38_vm2 = vcmp.eq.f32.partialorder %v28_v6, 0.0 }
  0x7f   :  { %v23_v32 = vpop.xlane.xlu0 %22 }
  0x80   :  { %v167_v7 = vpop.eup %166  ;;  %v73_v35 = vsub.f32 1.0, %v23_v32  ;;  %v77_v36 = vperm.slane %v23_v32, 0 }
  0x81   :  { %v30_v8 = vmul.f32 %v167_v7, %v28_v6 }
  0x82   :  { %v74_v39 = vperm.slane %v73_v35, 0 }
  0x83   :  { %v31_v9 = vmul.f32 %v167_v7, %v30_v8 }
  0x85   :  { %v32_v10 = vmul.f32 0.5, %v31_v9 }
  0x87   :  { %v33_v11 = vsub.f32 1.5, %v32_v10 }
  0x89   :  { %v34_v12 = vmul.f32 %v167_v7, %v33_v11 }
  0x8b   :  { %v35_v13 = vmul.f32 %v34_v12, %v28_v6 }
  0x8d   :  { %v37_v15 = vsel %vm36_vm1, %v28_v6, %v35_v13 }
  0x8e   :  { %v40_v16 = vsel %vm38_vm2, %v39_v14, %v37_v15 }
  0x8f   :  { %168 = vrcp.f32 %v40_v16  ;;  %v53_v20 = vand.u32 2147483648, %v40_v16  ;;  %v51_v22 = vand.u32 2147483647, %v40_v16  ;;  %vm47_vm4 = vweird.f32 %v40_v16 }
  0x90   :  { %170 = vtanh.f32 %v40_v16 }
  0x91   :  { %v54_v24 = vor.u32 1.1754944e-38, %v53_v20  ;;  %vm52_vm6 = vcmp.eq.f32.partialorder %v51_v22, 8.507059e+37 }
  0x95   :  { %v169_v17 = vpop.eup %168 }
  0x96   :  { %v43_v18 = vmul.f32 %v169_v17, %v40_v16  ;;  %vm48_vm3 = vweird.f32 %v169_v17  ;;  %v171_v26 = vpop.eup %170 }
  0x97   :  { %vm49_vm5 = vmor %vm47_vm4, %vm48_vm3  ;;  %v58_v34 = vmul.f32 %v171_v26, %v171_v26 }
  0x98   :  { %v44_v19 = vsub.f32 1.0, %v43_v18 }
  0x99   :  { %v78_v40 = vmul.f32 %v77_v36, %v58_v34 }
  0x9a   :  { %v45_v21 = vmul.f32 %v169_v17, %v44_v19 }
  0x9c   :  { %v46_v23 = vadd.f32 %v169_v17, %v45_v21 }
  0x9e   :  { %v50_v25 = vsel %vm49_vm5, %v169_v17, %v46_v23 }
  0x9f   :  { %v55_v27 = vsel %vm52_vm6, %v54_v24, %v50_v25 }
  0xa0   :  { %v56_v28 = vmul.f32 %v171_v26, %v55_v27 }
  0xa2   :  { %v57_v30 = vmul.f32 %v56_v28, %v24_v0 }
  0xa4   :  { %v62_v31 = vmul.f32 %v165_v29, %v57_v30  ;;  %v75_v45 = vmul.f32 %v74_v39, %v57_v30 }
  0xa6   :  { %63 = vadd.xlane.f32.xlu1 %v62_v31 }
 0x119   :  { %v64_v37 = vpop.xlane.xlu1 %63 }
 0x11a   :  { %v65_v38 = vmul.f32 2.0, %v64_v37 }
 0x11c   :  { %v66_v42 = vsub.f32 1.0, %v65_v38 }
 0x11e   :  { %v67_v43 = vadd.f32 %v66_v42, %v58_v34  ;;  %v79_v44 = vadd.f32 %v78_v40, %v66_v42  ;;  %v136_v34 = vld [vmem:[#allocation2] sm:$0x1] }
 0x120   :  { %v72_v46 = vmul.f32 %v70_v41, %v67_v43  ;;  %v80_v47 = vmax.f32 %v79_v44, 1e-15 }
 0x122   :  { %172 = vrcp.f32 %v80_v47  ;;  %v76_v48 = vadd.f32 %v75_v45, %v72_v46  ;;  %v92_v52 = vand.u32 2147483648, %v80_v47  ;;  %v90_v54 = vand.u32 2147483647, %v80_v47 }
 0x123   :  { %vm86_vm8 = vweird.f32 %v80_v47 }
 0x124   :  { %v93_v56 = vor.u32 1.1754944e-38, %v92_v52  ;;  %vm91_vm10 = vcmp.eq.f32.partialorder %v90_v54, 8.507059e+37 }
 0x128   :  { %v173_v49 = vpop.eup %172 }
 0x129   :  { %v82_v50 = vmul.f32 %v173_v49, %v80_v47  ;;  %vm87_vm7 = vweird.f32 %v173_v49 }
 0x12a   :  { %vm88_vm9 = vmor %vm86_vm8, %vm87_vm7 }
 0x12b   :  { %v83_v51 = vsub.f32 1.0, %v82_v50 }
 0x12d   :  { %v84_v53 = vmul.f32 %v173_v49, %v83_v51 }
 0x12f   :  { %v85_v55 = vadd.f32 %v173_v49, %v84_v53 }
 0x131   :  { %v89_v57 = vsel %vm88_vm9, %v173_v49, %v85_v55 }
 0x132   :  { %v94_v58 = vsel %vm91_vm10, %v93_v56, %v89_v57 }
 0x133   :  { %v95_v59 = vmul.f32 %v94_v58, %v76_v48 }
 0x135   :  { %v96_v60 = vmul.f32 %v95_v59, %v95_v59 }
 0x137   :  { %97 = vadd.xlane.f32.xlu1 %v96_v60 }
 0x1aa   :  { %v98_v62 = vpop.xlane.xlu1 %97 }
 0x1ab   :  { %v99_v63 = vmax.f32 %v98_v62, 1e-15 }
 0x1ad   :  { %174 = vrsqrt.f32 %v99_v63  ;;  %vm107_vm12 = vcmp.eq.f32.partialorder %v99_v63, inf  ;;  %v110_v7 = vand.u32 2147483648, %v99_v63  ;;  %vm109_vm13 = vcmp.eq.f32.partialorder %v99_v63, 0.0 }
 0x1b3   :  { %v175_v0 = vpop.eup %174 }
 0x1b4   :  { %v101_v1 = vmul.f32 %v175_v0, %v99_v63 }
 0x1b6   :  { %v102_v2 = vmul.f32 %v175_v0, %v101_v1 }
 0x1b8   :  { %v103_v3 = vmul.f32 0.5, %v102_v2 }
 0x1ba   :  { %v104_v4 = vsub.f32 1.5, %v103_v3 }
 0x1bc   :  { %v105_v5 = vmul.f32 %v175_v0, %v104_v4 }
 0x1be   :  { %v106_v6 = vmul.f32 %v105_v5, %v99_v63 }
 0x1c0   :  { %v108_v8 = vsel %vm107_vm12, %v99_v63, %v106_v6 }
 0x1c1   :  { %v111_v9 = vsel %vm109_vm13, %v110_v7, %v108_v8 }
 0x1c2   :  { %v162_v10 = vclamps-f32 %v111_v9, 0.9999999 }
 0x1c4   :  { %v115_v11 = vsub.f32 1.0, %v162_v10  ;;  %v114_v20 = vadd.f32 1.0, %v162_v10 }
 0x1c6   :  { %176 = vrcp.f32 %v115_v11  ;;  %v127_v15 = vand.u32 2147483648, %v115_v11  ;;  %v125_v17 = vand.u32 2147483647, %v115_v11  ;;  %vm121_vm15 = vweird.f32 %v115_v11 }
 0x1c8   :  { %v128_v19 = vor.u32 1.1754944e-38, %v127_v15  ;;  %vm126_vm1 = vcmp.eq.f32.partialorder %v125_v17, 8.507059e+37 }
 0x1cc   :  { %v177_v12 = vpop.eup %176 }
 0x1cd   :  { %v117_v13 = vmul.f32 %v177_v12, %v115_v11  ;;  %vm122_vm14 = vweird.f32 %v177_v12 }
 0x1ce   :  { %vm123_vm0 = vmor %vm121_vm15, %vm122_vm14 }
 0x1cf   :  { %v118_v14 = vsub.f32 1.0, %v117_v13 }
 0x1d1   :  { %v119_v16 = vmul.f32 %v177_v12, %v118_v14 }
 0x1d3   :  { %v120_v18 = vadd.f32 %v177_v12, %v119_v16 }
 0x1d5   :  { %v124_v21 = vsel %vm123_vm0, %v177_v12, %v120_v18 }
 0x1d6   :  { %v129_v22 = vsel %vm126_vm1, %v128_v19, %v124_v21 }
 0x1d7   :  { %v130_v23 = vmul.f32 %v129_v22, %v114_v20 }
 0x1d9   :  { %178 = vlog2.f32 %v130_v23 }
 0x1df   :  { %v179_v24 = vpop.eup %178 }
 0x1e0   :  { %v132_v25 = vmul.f32 0.6931472, %v179_v24 }
 0x1e2   :  { %v133_v26 = vmul.f32 0.5, %v132_v25 }
 0x1e4   :  { %v134_v27 = vmul.f32 2.0, %v133_v26 }
 0x1e6   :  { %v135_v28 = vmul.f32 %v134_v27, %v134_v27 }
 0x1e8   :  { %v137_v29 = vrot.slane %v135_v28, 4 }
 0x1ea   :  { %v138_v30 = vadd.f32 %v137_v29, %v135_v28 }
 0x1ec   :  { %v139_v31 = vrot.slane %v138_v30, 2 }
 0x1ee   :  { %v140_v32 = vadd.f32 %v139_v31, %v138_v30 }
 0x1f0   :  { %v141_v33 = vrot.slane %v140_v32, 1 }
 0x1f2   :  { %v142_v35 = vadd.f32 %v141_v33, %v140_v32 }
 0x1f4   :  { %v143_v36 = vadd.f32 %v142_v35, %v136_v34 }
 0x1f6   :  { %145 = vst.msk [vmem:[#allocation2] sm:$0x1] %vm16_vm11, %v143_v36 }
 0x1f7   :  { %156 = dma.vmem_to_hbm [thread:$0]  %s152_s14, 16, %s154_s17, [#allocation3]  }
 0x1f8   :  { %204 = dma.done.wait [#allocation3], 16  }
 0x1f9   :  { %205 = vsyncadd [#allocation3], 4294967280 }
 0x1fa   :  { %161 = vsyncpa [#allocation3], 1 }

// kernel: poincare_batch_norm.3
= control target key start
LH: loop header
LB: loop body
LE: loop exit
PB: predicated region body
PF: predicated region fallthrough
CT: control target
= control target key end

     0   :  { %s182_s0 = inlined_call_operand.vmem [shape: f32[8,128], index: 0, kind: input, shape index: {}]   ;;  %s183_s1 = inlined_call_operand.vmem [shape: f32[1,128], index: 1, kind: output, shape index: {0}]   ;;  %s184_s2 = inlined_call_operand.hbm [shape: f32[1,1], index: 2, kind: output, shape index: {1}]  }
   0x1   :  { %v18_v0 = vld [vmem:[%s182_s0] sm:$0xff] }
   0x2   :  { %8 = vsyncpa [#allocation3], 0  ;;  %v19_v1 = vmul.f32 %v18_v0, %v18_v0  ;;  %vm16_vm0 = vcmask 0   ;;  %v148_v4 = vmov 0.0   ;;  %s149_s14 = smov [#allocation2]   ;;  %s100_s18 = sshll.u32 %s184_s2, 4  ;;  %s101_s18 = int_to_ptr.hbm [resolvable:$true] %s100_s18 }
   0x3   :  { %15 = vst [vmem:[%s183_s1] sm:$0x1] %v148_v4  ;;  %s98_s15 = sshll.u32 %s149_s14, 4  ;;  %s99_s15 = int_to_ptr.vmem [resolvable:$true] %s98_s15 }
   0x4   :  { %20 = vadd.xlane.f32.xlu0 %v19_v1  ;;  %17 = vst.msk [vmem:[#allocation2] sm:$0x1] %vm16_vm0, %v148_v4 }
   0xa   :  { %v71_v54 = vld [vmem:[%s183_s1] sm:$0x1] }
   0xb   :  { %v81_v55 = vld [vmem:[#allocation2] sm:$0x1] }
  0x77   :  { %v21_v2 = vpop.xlane.xlu0 %20 }
  0x78   :  { %v22_v3 = vmax.f32 %v21_v2, 1e-15 }
  0x7a   :  { %114 = vrsqrt.f32 %v22_v3  ;;  %vm30_vm1 = vcmp.eq.f32.partialorder %v22_v3, inf  ;;  %v33_v12 = vand.u32 2147483648, %v22_v3  ;;  %vm32_vm2 = vcmp.eq.f32.partialorder %v22_v3, 0.0 }
  0x80   :  { %v115_v5 = vpop.eup %114 }
  0x81   :  { %v24_v6 = vmul.f32 %v115_v5, %v22_v3 }
  0x83   :  { %v25_v7 = vmul.f32 %v115_v5, %v24_v6 }
  0x85   :  { %v26_v8 = vmul.f32 0.5, %v25_v7 }
  0x87   :  { %v27_v9 = vsub.f32 1.5, %v26_v8 }
  0x89   :  { %v28_v10 = vmul.f32 %v115_v5, %v27_v9 }
  0x8b   :  { %v29_v11 = vmul.f32 %v28_v10, %v22_v3 }
  0x8d   :  { %v31_v13 = vsel %vm30_vm1, %v22_v3, %v29_v11 }
  0x8e   :  { %v34_v14 = vsel %vm32_vm2, %v33_v12, %v31_v13 }
  0x8f   :  { %116 = vrcp.f32 %v34_v14  ;;  %v47_v24 = vand.u32 2147483648, %v34_v14  ;;  %vm41_vm4 = vweird.f32 %v34_v14  ;;  %v45_v25 = vand.u32 2147483647, %v34_v14 }
  0x90   :  { %118 = vtanh.f32 %v34_v14 }
  0x91   :  { %v48_v29 = vor.u32 1.1754944e-38, %v47_v24  ;;  %vm46_vm6 = vcmp.eq.f32.partialorder %v45_v25, 8.507059e+37 }
  0x95   :  { %v117_v15 = vpop.eup %116 }
  0x96   :  { %v119_v16 = vpop.eup %118  ;;  %v37_v17 = vmul.f32 %v117_v15, %v34_v14  ;;  %vm42_vm3 = vweird.f32 %v117_v15 }
  0x97   :  { %v52_v18 = vmul.f32 %v119_v16, %v119_v16  ;;  %vm43_vm5 = vmor %vm41_vm4, %vm42_vm3 }
  0x98   :  { %v38_v19 = vsub.f32 1.0, %v37_v17 }
  0x99   :  { %v53_v20 = vsub.f32 1.0, %v52_v18 }
  0x9a   :  { %v39_v22 = vmul.f32 %v117_v15, %v38_v19 }
  0x9b   :  { %v54_v21 = vmax.f32 %v53_v20, 1e-15 }
  0x9c   :  { %v40_v23 = vadd.f32 %v117_v15, %v39_v22 }
  0x9d   :  { %120 = vrcp.f32 %v54_v21  ;;  %v66_v32 = vand.u32 2147483648, %v54_v21  ;;  %v64_v34 = vand.u32 2147483647, %v54_v21  ;;  %vm60_vm8 = vweird.f32 %v54_v21 }
  0x9e   :  { %v44_v27 = vsel %vm43_vm5, %v117_v15, %v40_v23 }
  0x9f   :  { %v49_v31 = vsel %vm46_vm6, %v48_v29, %v44_v27  ;;  %v67_v37 = vor.u32 1.1754944e-38, %v66_v32  ;;  %vm65_vm10 = vcmp.eq.f32.partialorder %v64_v34, 8.507059e+37 }
  0xa0   :  { %v50_v35 = vmul.f32 %v119_v16, %v49_v31 }
  0xa2   :  { %v51_v40 = vmul.f32 %v50_v35, %v18_v0 }
  0xa3   :  { %v121_v26 = vpop.eup %120 }
  0xa4   :  { %v56_v28 = vmul.f32 %v121_v26, %v54_v21  ;;  %vm61_vm7 = vweird.f32 %v121_v26 }
  0xa5   :  { %vm62_vm9 = vmor %vm60_vm8, %vm61_vm7 }
  0xa6   :  { %v57_v30 = vsub.f32 1.0, %v56_v28 }
  0xa8   :  { %v58_v33 = vmul.f32 %v121_v26, %v57_v30 }
  0xaa   :  { %v59_v36 = vadd.f32 %v121_v26, %v58_v33 }
  0xac   :  { %v63_v38 = vsel %vm62_vm9, %v121_v26, %v59_v36 }
  0xad   :  { %v68_v39 = vsel %vm65_vm10, %v67_v37, %v63_v38 }
  0xae   :  { %v69_v41 = vmul.f32 2.0, %v68_v39 }
  0xb0   :  { %v111_v42 = vadd.f32 -1.0, %v69_v41  ;;  %v72_v43 = vmul.f32 %v69_v41, %v51_v40 }
  0xb2   :  { %v73_v44 = vrot.slane %v72_v43, 4  ;;  %v82_v45 = vrot.slane %v111_v42, 4 }
  0xb4   :  { %v74_v46 = vadd.f32 %v73_v44, %v72_v43  ;;  %v83_v47 = vadd.f32 %v111_v42, %v82_v45 }
  0xb6   :  { %v75_v48 = vrot.slane %v74_v46, 2  ;;  %v84_v49 = vrot.slane %v83_v47, 2 }
  0xb8   :  { %v76_v50 = vadd.f32 %v75_v48, %v74_v46  ;;  %v85_v51 = vadd.f32 %v84_v49, %v83_v47 }
  0xba   :  { %v77_v52 = vrot.slane %v76_v50, 1  ;;  %v86_v53 = vrot.slane %v85_v51, 1 }
  0xbc   :  { %v78_v56 = vadd.f32 %v77_v52, %v76_v50  ;;  %v87_v57 = vadd.f32 %v86_v53, %v85_v51 }
  0xbe   :  { %v79_v58 = vadd.f32 %v78_v56, %v71_v54  ;;  %v88_v59 = vadd.f32 %v87_v57, %v81_v55 }
  0xc0   :  { %80 = vst [vmem:[%s183_s1] sm:$0x1] %v79_v58 }
  0xc1   :  { %90 = vst.msk [vmem:[#allocation2] sm:$0x1] %vm16_vm0, %v88_v59 }
  0xc2   :  { %103 = dma.vmem_to_hbm [thread:$0]  %s99_s15, 16, %s101_s18, [#allocation3]  }
  0xc3   :  { %146 = dma.done.wait [#allocation3], 16  }
  0xc4   :  { %147 = vsyncadd [#allocation3], 4294967280 }
  0xc5   :  { %110 = vsyncpa [#allocation3], 1 }

// kernel: poincare_batch_norm.5
= control target key start
LH: loop header
LB: loop body
LE: loop exit
PB: predicated region body
PF: predicated region fallthrough
CT: control target
= control target key end

     0   :  { %s625_s0 = inlined_call_operand.vmem [shape: f32[8,128], index: 0, kind: input, shape index: {}]   ;;  %s626_s1 = inlined_call_operand.vmem [shape: f32[1,128], index: 1, kind: input, shape index: {}]   ;;  %s627_s2 = inlined_call_operand.vmem [shape: f32[1,128], index: 2, kind: input, shape index: {}]   ;;  %s628_s3 = inlined_call_operand.<no memory space> [shape: f32[1,1], index: 3, kind: input, shape index: {}]   ;;  %s629_s4 = inlined_call_operand.hbm [shape: f32[8,128], index: 4, kind: output, shape index: {}]  }
   0x1   :  { %v9_v0 = vstv %s628_s3 }
   0x2   :  { %10 = vst [vmem:[#allocation2] sm:$0x1] %v9_v0 }
   0x3   :  { %v92_v1 = vld [vmem:[%s625_s0] sm:$0xff] }
   0x4   :  { %11 = vsyncpa [#allocation4], 0  ;;  %v93_v2 = vmul.f32 %v92_v1, %v92_v1  ;;  %v541_v3 = vld [vmem:[%s626_s1] sm:$0x1]  ;;  %vm23_vm0 = vcmask 1040384   ;;  %s416_s27 = sshll.u32 %s629_s4, 4  ;;  %s417_s27 = int_to_ptr.hbm [resolvable:$true] %s416_s27 }
   0x5   :  { %v22_v4 = vmul.f32 %v541_v3, %v541_v3  ;;  %v21_v6 = vld [vmem:[%s627_s2] sm:$0x1] }
   0x6   :  { %94 = vadd.xlane.f32.xlu0 %v93_v2  ;;  %v27_v7 = vmul.f32 %v21_v6, %v21_v6  ;;  %v31_v9 = vmul.f32 %v21_v6, %v541_v3  ;;  %v555_v35 = vld [vmem:[%s626_s1] ss:$0 sm:$0xff] }
   0x7   :  { %v24_v5 = vsel %vm23_vm0, %v22_v4, 0.0 }
   0x8   :  { %v28_v8 = vsel %vm23_vm0, %v27_v7, 0.0  ;;  %v32_v10 = vsel %vm23_vm0, %v31_v9, 0.0 }
   0x9   :  { %29 = vadd.xlane.f32.xlu2 %v28_v8 }
   0xe   :  { %25 = vadd.xlane.f32.xlu0 %v24_v5 }
  0x11   :  { %33 = vadd.xlane.f32.xlu2 %v32_v10 }
  0x79   :  { %v95_v11 = vpop.xlane.xlu0 %94 }
  0x7a   :  { %v96_v12 = vmax.f32 %v95_v11, 1e-15 }
  0x7c   :  { %434 = vrsqrt.f32 %v96_v12  ;;  %vm104_vm1 = vcmp.eq.f32.partialorder %v96_v12, inf  ;;  %v107_v20 = vand.u32 2147483648, %v96_v12  ;;  %vm106_vm2 = vcmp.eq.f32.partialorder %v96_v12, 0.0  ;;  %v561_v38 = vpop.xlane.xlu2 %29 }
  0x7d   :  { %v52_v39 = vsub.f32 1.0, %v561_v38 }
  0x7f   :  { %v53_v42 = vmax.f32 %v52_v39, 1e-15 }
  0x81   :  { %v564_v40 = vpop.xlane.xlu0 %25  ;;  %v65_v46 = vand.u32 2147483648, %v53_v42  ;;  %vm59_vm7 = vweird.f32 %v53_v42  ;;  %v63_v48 = vand.u32 2147483647, %v53_v42 }
  0x82   :  { %v435_v13 = vpop.eup %434  ;;  %v35_v41 = vsub.f32 1.0, %v564_v40 }
  0x83   :  { %v98_v14 = vmul.f32 %v435_v13, %v96_v12  ;;  %v66_v51 = vor.u32 1.1754944e-38, %v65_v46  ;;  %vm64_vm10 = vcmp.eq.f32.partialorder %v63_v48, 8.507059e+37 }
  0x84   :  { %v36_v43 = vmax.f32 %v35_v41, 1e-15 }
  0x85   :  { %v99_v15 = vmul.f32 %v435_v13, %v98_v14 }
  0x86   :  { %vm42_vm11 = vweird.f32 %v36_v43  ;;  %v48_v59 = vand.u32 2147483648, %v36_v43  ;;  %v46_v62 = vand.u32 2147483647, %v36_v43 }
  0x87   :  { %v100_v16 = vmul.f32 0.5, %v99_v15 }
  0x88   :  { %v49_v0 = vor.u32 1.1754944e-38, %v48_v59  ;;  %vm47_vm14 = vcmp.eq.f32.partialorder %v46_v62, 8.507059e+37 }
  0x89   :  { %v101_v17 = vsub.f32 1.5, %v100_v16 }
  0x8b   :  { %v102_v18 = vmul.f32 %v435_v13, %v101_v17  ;;  %v69_v13 = vld [vmem:[#allocation2] sm:$0x1] }
  0x8d   :  { %v103_v19 = vmul.f32 %v102_v18, %v96_v12  ;;  %v144_v18 = vperm.slane %v564_v40, 0 }
  0x8f   :  { %v105_v21 = vsel %vm104_vm1, %v96_v12, %v103_v19  ;;  %v504_v12 = vmov 0  }
  0x90   :  { %v108_v22 = vsel %vm106_vm2, %v107_v20, %v105_v21  ;;  %430 = vset.pattern.permute.xlu2 %v504_v12  ;;  %431 = vset.pattern.permute.xlu0 %v504_v12  ;;  %v136_v20 = vsub.f32 0.0, %v541_v3 }
  0x91   :  { %436 = vrcp.f32 %v108_v22  ;;  %v121_v26 = vand.u32 2147483648, %v108_v22  ;;  %v119_v28 = vand.u32 2147483647, %v108_v22  ;;  %vm115_vm4 = vweird.f32 %v108_v22 }
  0x92   :  { %438 = vtanh.f32 %v108_v22 }
  0x93   :  { %v122_v30 = vor.u32 1.1754944e-38, %v121_v26  ;;  %vm120_vm6 = vcmp.eq.f32.partialorder %v119_v28, 8.507059e+37  ;;  %440 = vrcp.f32 %v53_v42 }
  0x94   :  { %442 = vrcp.f32 %v36_v43 }
  0x97   :  { %v437_v23 = vpop.eup %436 }
  0x98   :  { %v111_v24 = vmul.f32 %v437_v23, %v108_v22  ;;  %vm116_vm3 = vweird.f32 %v437_v23  ;;  %v549_v32 = vpop.eup %438 }
  0x99   :  { %vm117_vm5 = vmor %vm115_vm4, %vm116_vm3  ;;  %v441_v44 = vpop.eup %440  ;;  %v126_v19 = vmul.f32 %v549_v32, %v549_v32 }
  0x9a   :  { %v112_v25 = vsub.f32 1.0, %v111_v24  ;;  %v55_v45 = vmul.f32 %v441_v44, %v53_v42  ;;  %vm60_vm8 = vweird.f32 %v441_v44  ;;  %v443_v49 = vpop.eup %442  ;;  %v583_v24 = vperm.slane %v136_v20, 0 }
  0x9b   :  { %vm61_vm9 = vmor %vm59_vm7, %vm60_vm8  ;;  %v38_v52 = vmul.f32 %v443_v49, %v36_v43  ;;  %vm43_vm12 = vweird.f32 %v443_v49  ;;  %v145_v26 = vmul.f32 %v144_v18, %v126_v19 }
  0x9c   :  { %v113_v27 = vmul.f32 %v437_v23, %v112_v25  ;;  %v56_v47 = vsub.f32 1.0, %v55_v45  ;;  %vm44_vm13 = vmor %vm42_vm11, %vm43_vm12 }
  0x9d   :  { %v39_v56 = vsub.f32 1.0, %v38_v52 }
  0x9e   :  { %v114_v29 = vadd.f32 %v437_v23, %v113_v27  ;;  %v57_v50 = vmul.f32 %v441_v44, %v56_v47 }
  0x9f   :  { %v40_v58 = vmul.f32 %v443_v49, %v39_v56 }
  0xa0   :  { %v118_v31 = vsel %vm117_vm5, %v437_v23, %v114_v29  ;;  %v58_v53 = vadd.f32 %v441_v44, %v57_v50  ;;  %v141_v23 = vperm.slane %v35_v41, 0 }
  0xa1   :  { %v123_v33 = vsel %vm120_vm6, %v122_v30, %v118_v31  ;;  %v41_v61 = vadd.f32 %v443_v49, %v40_v58 }
  0xa2   :  { %v124_v34 = vmul.f32 %v549_v32, %v123_v33  ;;  %v62_v54 = vsel %vm61_vm9, %v441_v44, %v58_v53 }
  0xa3   :  { %v67_v55 = vsel %vm64_vm10, %v66_v51, %v62_v54 }
  0xa4   :  { %v557_v36 = vmul.f32 %v124_v34, %v92_v1  ;;  %v569_v57 = vmul.f32 2.0, %v67_v55  ;;  %v45_v1 = vsel %vm44_vm13, %v443_v49, %v41_v61 }
  0xa5   :  { %v50_v5 = vsel %vm47_vm14, %v49_v0, %v45_v1 }
  0xa6   :  { %v130_v37 = vmul.f32 %v555_v35, %v557_v36  ;;  %444 = vrcp.f32 %v569_v57  ;;  %v81_v6 = vand.u32 2147483648, %v569_v57  ;;  %vm75_vm15 = vweird.f32 %v569_v57 }
  0xa7   :  { %v79_v8 = vand.u32 2147483647, %v569_v57  ;;  %v576_v10 = vmul.f32 2.0, %v50_v5  ;;  %v142_v29 = vmul.f32 %v141_v23, %v557_v36 }
  0xa8   :  { %131 = vadd.xlane.f32.xlu1 %v130_v37  ;;  %v82_v9 = vor.u32 1.1754944e-38, %v81_v6 }
  0xa9   :  { %vm80_vm2 = vcmp.eq.f32.partialorder %v79_v8, 8.507059e+37  ;;  %vm184_vm10 = vweird.f32 %v576_v10 }
  0xac   :  { %v445_v60 = vpop.eup %444 }
  0xad   :  { %v71_v63 = vmul.f32 %v445_v60, %v569_v57  ;;  %vm76_vm0 = vweird.f32 %v445_v60 }
  0xae   :  { %vm77_vm1 = vmor %vm75_vm15, %vm76_vm0 }
  0xaf   :  { %v72_v2 = vsub.f32 1.0, %v71_v63 }
  0xb1   :  { %v73_v4 = vmul.f32 %v445_v60, %v72_v2 }
  0xb3   :  { %v74_v7 = vadd.f32 %v445_v60, %v73_v4 }
  0xb5   :  { %v78_v11 = vsel %vm77_vm1, %v445_v60, %v74_v7 }
  0xb6   :  { %v83_v14 = vsel %vm80_vm2, %v82_v9, %v78_v11 }
  0xb7   :  { %v84_v15 = vmul.f32 %v83_v14, %v576_v10 }
  0xb9   :  { %v85_v16 = vmul.f32 %v84_v15, %v69_v13  ;;  %v190_v13 = vand.u32 2147483648, %v576_v10 }
  0xbb   :  { %v276_v17 = vperm.slane %v85_v16, 0  ;;  %v188_v16 = vand.u32 2147483647, %v576_v10  ;;  %v191_v23 = vor.u32 1.1754944e-38, %v190_v13 }
  0xbd   :  { %278 = vperm.xlu2 %430, %v276_v17   ;;  %vm189_vm0 = vcmp.eq.f32.partialorder %v188_v16, 8.507059e+37 }
 0x11b   :  { %v132_v21 = vpop.xlane.xlu1 %131 }
 0x11c   :  { %v133_v22 = vmul.f32 2.0, %v132_v21 }
 0x11e   :  { %v134_v25 = vsub.f32 1.0, %v133_v22 }
 0x120   :  { %v135_v27 = vadd.f32 %v134_v25, %v126_v19  ;;  %v146_v28 = vadd.f32 %v145_v26, %v134_v25 }
 0x122   :  { %v140_v30 = vmul.f32 %v583_v24, %v135_v27  ;;  %v147_v31 = vmax.f32 %v146_v28, 1e-15 }
 0x124   :  { %446 = vrcp.f32 %v147_v31  ;;  %v143_v32 = vadd.f32 %v142_v29, %v140_v30  ;;  %v159_v37 = vand.u32 2147483648, %v147_v31  ;;  %v157_v42 = vand.u32 2147483647, %v147_v31 }
 0x125   :  { %vm153_vm4 = vweird.f32 %v147_v31 }
 0x126   :  { %v160_v44 = vor.u32 1.1754944e-38, %v159_v37  ;;  %vm158_vm6 = vcmp.eq.f32.partialorder %v157_v42, 8.507059e+37 }
 0x12a   :  { %v447_v33 = vpop.eup %446 }
 0x12b   :  { %v149_v3 = vmul.f32 %v447_v33, %v147_v31  ;;  %vm154_vm3 = vweird.f32 %v447_v33 }
 0x12c   :  { %vm155_vm5 = vmor %vm153_vm4, %vm154_vm3 }
 0x12d   :  { %v150_v34 = vsub.f32 1.0, %v149_v3 }
 0x12f   :  { %v151_v41 = vmul.f32 %v447_v33, %v150_v34 }
 0x131   :  { %v152_v43 = vadd.f32 %v447_v33, %v151_v41 }
 0x133   :  { %v156_v45 = vsel %vm155_vm5, %v447_v33, %v152_v43 }
 0x134   :  { %v161_v46 = vsel %vm158_vm6, %v160_v44, %v156_v45  ;;  %v601_v44 = vld [vmem:[%s627_s2] ss:$0 sm:$0xff]  ;;  %s506_s2 = smov [#allocation3]  }
 0x135   :  { %v589_v36 = vmul.f32 %v161_v46, %v143_v32  ;;  %s414_s24 = sshll.u32 %s506_s2, 4  ;;  %s415_s24 = int_to_ptr.vmem [resolvable:$true] %s414_s24 }
 0x137   :  { %v163_v47 = vmul.f32 %v589_v36, %v589_v36 }
 0x139   :  { %164 = vadd.xlane.f32.xlu1 %v163_v47 }
 0x1ac   :  { %v165_v48 = vpop.xlane.xlu1 %164 }
 0x1ad   :  { %v166_v49 = vmax.f32 %v165_v48, 1e-15 }
 0x1af   :  { %448 = vrsqrt.f32 %v166_v49  ;;  %vm174_vm7 = vcmp.eq.f32.partialorder %v166_v49, inf  ;;  %v177_v58 = vand.u32 2147483648, %v166_v49  ;;  %vm176_vm8 = vcmp.eq.f32.partialorder %v166_v49, 0.0 }
 0x1b0   :  { %450 = vrcp.f32 %v576_v10 }
 0x1b5   :  { %v449_v50 = vpop.eup %448 }
 0x1b6   :  { %v168_v51 = vmul.f32 %v449_v50, %v166_v49  ;;  %v451_v63 = vpop.eup %450 }
 0x1b7   :  { %v180_v0 = vmul.f32 %v451_v63, %v576_v10  ;;  %vm185_vm11 = vweird.f32 %v451_v63 }
 0x1b8   :  { %v169_v52 = vmul.f32 %v449_v50, %v168_v51  ;;  %vm186_vm14 = vmor %vm184_vm10, %vm185_vm11 }
 0x1b9   :  { %v181_v2 = vsub.f32 1.0, %v180_v0 }
 0x1ba   :  { %v170_v53 = vmul.f32 0.5, %v169_v52  ;;  %v89_v52 = vmul.f32 %v561_v38, %v564_v40 }
 0x1bb   :  { %v182_v7 = vmul.f32 %v451_v63, %v181_v2 }
 0x1bc   :  { %v171_v54 = vsub.f32 1.5, %v170_v53 }
 0x1bd   :  { %v183_v15 = vadd.f32 %v451_v63, %v182_v7 }
 0x1be   :  { %v172_v55 = vmul.f32 %v449_v50, %v171_v54 }
 0x1bf   :  { %v187_v26 = vsel %vm186_vm14, %v451_v63, %v183_v15  ;;  %v251_v63 = vperm.slane %v561_v38, 0 }
 0x1c0   :  { %v173_v56 = vmul.f32 %v172_v55, %v166_v49  ;;  %v192_v28 = vsel %vm189_vm0, %v191_v23, %v187_v26 }
 0x1c1   :  { %v193_v29 = vmul.f32 2.0, %v192_v28  ;;  %v505_v28 = vmov 2.0  }
 0x1c2   :  { %v175_v59 = vsel %vm174_vm7, %v166_v49, %v173_v56  ;;  %v34_v49 = vpop.xlane.xlu2 %33 }
 0x1c3   :  { %v178_v60 = vsel %vm176_vm8, %v177_v58, %v175_v59  ;;  %v216_v34 = vperm.slane %v193_v29, 0  ;;  %v86_v50 = vsub.f32 0.0, %v34_v49 }
 0x1c4   :  { %v425_v61 = vclamps-f32 %v178_v60, 0.9999999  ;;  %v229_v10 = vand.u32 2147483648, %v178_v60  ;;  %vm223_vm2 = vweird.f32 %v178_v60  ;;  %v227_v33 = vand.u32 2147483647, %v178_v60 }
 0x1c5   :  { %v87_v51 = vmul.f32 2.0, %v86_v50 }
 0x1c6   :  { %v197_v62 = vsub.f32 1.0, %v425_v61  ;;  %v196_v19 = vadd.f32 1.0, %v425_v61  ;;  %v230_v41 = vor.u32 1.1754944e-38, %v229_v10  ;;  %vm228_vm4 = vcmp.eq.f32.partialorder %v227_v33, 8.507059e+37 }
 0x1c7   :  { %v88_v53 = vadd.f32 1.0, %v87_v51  ;;  %v247_v0 = vperm.slane %v87_v51, 0 }
 0x1c8   :  { %452 = vrcp.f32 %v197_v62  ;;  %v209_v8 = vand.u32 2147483648, %v197_v62  ;;  %v207_v11 = vand.u32 2147483647, %v197_v62  ;;  %vm203_vm12 = vweird.f32 %v197_v62 }
 0x1c9   :  { %454 = vrcp.f32 %v178_v60  ;;  %v90_v54 = vadd.f32 %v89_v52, %v88_v53 }
 0x1ca   :  { %v210_v17 = vor.u32 1.1754944e-38, %v209_v8  ;;  %vm208_vm15 = vcmp.eq.f32.partialorder %v207_v11, 8.507059e+37 }
 0x1cb   :  { %v91_v55 = vmax.f32 %v90_v54, 1e-15 }
 0x1cd   :  { %v258_v56 = vperm.slane %v91_v55, 0 }
 0x1ce   :  { %v453_v1 = vpop.eup %452 }
 0x1cf   :  { %v199_v4 = vmul.f32 %v453_v1, %v197_v62  ;;  %v455_v5 = vpop.eup %454  ;;  %vm204_vm9 = vweird.f32 %v453_v1  ;;  %vm264_vm5 = vweird.f32 %v258_v56  ;;  %v270_v8 = vand.u32 2147483648, %v258_v56 }
 0x1d0   :  { %v219_v12 = vmul.f32 %v455_v5, %v178_v60  ;;  %vm205_vm13 = vmor %vm203_vm12, %vm204_vm9  ;;  %vm224_vm1 = vweird.f32 %v455_v5  ;;  %v268_v13 = vand.u32 2147483647, %v258_v56 }
 0x1d1   :  { %v200_v6 = vsub.f32 1.0, %v199_v4  ;;  %vm225_vm3 = vmor %vm223_vm2, %vm224_vm1  ;;  %v271_v40 = vor.u32 1.1754944e-38, %v270_v8 }
 0x1d2   :  { %v220_v22 = vsub.f32 1.0, %v219_v12  ;;  %vm269_vm8 = vcmp.eq.f32.partialorder %v268_v13, 8.507059e+37 }
 0x1d3   :  { %v201_v9 = vmul.f32 %v453_v1, %v200_v6 }
 0x1d4   :  { %v221_v27 = vmul.f32 %v455_v5, %v220_v22  ;;  %v279_v22 = vpop.permute.xlu2 %278 }
 0x1d5   :  { %v202_v14 = vadd.f32 %v453_v1, %v201_v9 }
 0x1d6   :  { %v222_v30 = vadd.f32 %v455_v5, %v221_v27 }
 0x1d7   :  { %v206_v20 = vsel %vm205_vm13, %v453_v1, %v202_v14 }
 0x1d8   :  { %v211_v21 = vsel %vm208_vm15, %v210_v17, %v206_v20  ;;  %v226_v37 = vsel %vm225_vm3, %v455_v5, %v222_v30 }
 0x1d9   :  { %v212_v25 = vmul.f32 %v211_v21, %v196_v19  ;;  %v231_v43 = vsel %vm228_vm4, %v230_v41, %v226_v37 }
 0x1db   :  { %456 = vlog2.f32 %v212_v25 }
 0x1dc   :  { %458 = vrcp.f32 %v258_v56 }
 0x1dd   :  { %460 = vrcp.f32 %v505_v28 }
 0x1e1   :  { %v457_v31 = vpop.eup %456 }
 0x1e2   :  { %v214_v32 = vmul.f32 0.6931472, %v457_v31  ;;  %v459_v58 = vpop.eup %458 }
 0x1e3   :  { %v260_v59 = vmul.f32 %v459_v58, %v258_v56  ;;  %vm265_vm6 = vweird.f32 %v459_v58  ;;  %v461_v29 = vpop.eup %460 }
 0x1e4   :  { %v215_v3 = vmul.f32 0.5, %v214_v32  ;;  %vm266_vm7 = vmor %vm264_vm5, %vm265_vm6  ;;  %v301_v31 = vmul.f32 2.0, %v461_v29  ;;  %vm305_vm11 = vweird.f32 %v461_v29 }
 0x1e6   :  { %v217_v42 = vmul.f32 %v216_v34, %v215_v3  ;;  %v302_v33 = vsub.f32 1.0, %v301_v31 }
 0x1e8   :  { %v232_v45 = vmul.f32 %v231_v43, %v217_v42  ;;  %v303_v37 = vmul.f32 %v461_v29, %v302_v33 }
 0x1ea   :  { %v233_v46 = vmul.f32 %v232_v45, %v589_v36  ;;  %v261_v36 = vsub.f32 1.0, %v260_v59 }
 0x1ec   :  { %v240_v47 = vmul.f32 %v555_v35, %v233_v46  ;;  %v237_v48 = vmul.f32 %v601_v44, %v233_v46  ;;  %v262_v4 = vmul.f32 %v459_v58, %v261_v36 }
 0x1ee   :  { %241 = vadd.xlane.f32.xlu1 %v240_v47  ;;  %238 = vadd.xlane.f32.xlu0 %v237_v48  ;;  %v263_v12 = vadd.f32 %v459_v58, %v262_v4  ;;  %v298_v47 = vperm.slane %v569_v57, 0 }
 0x1f0   :  { %v267_v16 = vsel %vm266_vm7, %v459_v58, %v263_v12 }
 0x1f1   :  { %v272_v19 = vsel %vm269_vm8, %v271_v40, %v267_v16 }
 0x261   :  { %v242_v60 = vpop.xlane.xlu1 %241  ;;  %v239_v35 = vpop.xlane.xlu0 %238 }
 0x262   :  { %v243_v61 = vsub.f32 0.0, %v242_v60  ;;  %v244_v62 = vmul.f32 -1.0, %v239_v35 }
 0x264   :  { %v250_v1 = vmul.f32 -1.0, %v243_v61  ;;  %v245_v2 = vmul.f32 %v244_v62, %v144_v18  ;;  %v248_v5 = vmul.f32 %v247_v0, %v243_v61 }
 0x266   :  { %v252_v6 = vmul.f32 %v251_v63, %v250_v1  ;;  %v246_v7 = vsub.f32 %v245_v2, %v243_v61  ;;  %v333_v61 = vperm.slane %v52_v39, 0 }
 0x268   :  { %v249_v9 = vadd.f32 %v248_v5, %v246_v7  ;;  %v253_v11 = vadd.f32 %v252_v6, %v239_v35 }
 0x26a   :  { %v254_v14 = vmul.f32 %v601_v44, %v249_v9  ;;  %v255_v15 = vmul.f32 %v253_v11, %v583_v24 }
 0x26c   :  { %v256_v18 = vadd.f32 %v255_v15, %v254_v14 }
 0x26e   :  { %v257_v17 = vmul.f32 2.0, %v256_v18 }
 0x270   :  { %v273_v20 = vmul.f32 %v272_v19, %v257_v17 }
 0x272   :  { %v274_v21 = vadd.f32 %v273_v20, %v233_v46  ;;  %v304_v46 = vadd.f32 %v461_v29, %v303_v37 }
 0x274   :  { %v281_v23 = vmul.f32 %v279_v22, %v274_v21  ;;  %v306_v49 = vsel %vm305_vm11, %v461_v29, %v304_v46 }
 0x276   :  { %v282_v25 = vmul.f32 %v281_v23, %v281_v23 }
 0x278   :  { %283 = vadd.xlane.f32.xlu0 %v282_v25 }
 0x2eb   :  { %v284_v26 = vpop.xlane.xlu0 %283 }
 0x2ec   :  { %v285_v27 = vmax.f32 %v284_v26, 1e-15 }
 0x2ee   :  { %462 = vrsqrt.f32 %v285_v27  ;;  %vm293_vm9 = vcmp.eq.f32.partialorder %v285_v27, inf  ;;  %v296_v42 = vand.u32 2147483648, %v285_v27  ;;  %vm295_vm10 = vcmp.eq.f32.partialorder %v285_v27, 0.0 }
 0x2f4   :  { %v463_v30 = vpop.eup %462 }
 0x2f5   :  { %v287_v24 = vmul.f32 %v463_v30, %v285_v27 }
 0x2f7   :  { %v288_v10 = vmul.f32 %v463_v30, %v287_v24 }
 0x2f9   :  { %v289_v32 = vmul.f32 0.5, %v288_v10 }
 0x2fb   :  { %v290_v3 = vsub.f32 1.5, %v289_v32 }
 0x2fd   :  { %v291_v34 = vmul.f32 %v463_v30, %v290_v3 }
 0x2ff   :  { %v292_v41 = vmul.f32 %v291_v34, %v285_v27 }
 0x301   :  { %v294_v43 = vsel %vm293_vm9, %v285_v27, %v292_v41 }
 0x302   :  { %v297_v45 = vsel %vm295_vm10, %v296_v42, %v294_v43 }
 0x303   :  { %464 = vrcp.f32 %v297_v45  ;;  %v299_v48 = vmul.f32 %v298_v47, %v297_v45  ;;  %v320_v54 = vand.u32 2147483648, %v297_v45  ;;  %v318_v56 = vand.u32 2147483647, %v297_v45 }
 0x304   :  { %vm314_vm13 = vweird.f32 %v297_v45 }
 0x305   :  { %v307_v51 = vmul.f32 %v306_v49, %v299_v48  ;;  %v321_v59 = vor.u32 1.1754944e-38, %v320_v54  ;;  %vm319_vm15 = vcmp.eq.f32.partialorder %v318_v56, 8.507059e+37 }
 0x307   :  { %466 = vtanh.f32 %v307_v51 }
 0x309   :  { %v465_v50 = vpop.eup %464 }
 0x30a   :  { %v310_v52 = vmul.f32 %v465_v50, %v297_v45  ;;  %vm315_vm12 = vweird.f32 %v465_v50 }
 0x30b   :  { %vm316_vm14 = vmor %vm314_vm13, %vm315_vm12 }
 0x30c   :  { %v311_v53 = vsub.f32 1.0, %v310_v52 }
 0x30d   :  { %v467_v57 = vpop.eup %466 }
 0x30e   :  { %v312_v55 = vmul.f32 %v465_v50, %v311_v53  ;;  %v325_v2 = vmul.f32 %v467_v57, %v467_v57 }
 0x310   :  { %v313_v58 = vadd.f32 %v465_v50, %v312_v55  ;;  %v336_v6 = vmul.f32 %v325_v2, %v251_v63 }
 0x312   :  { %v317_v36 = vsel %vm316_vm14, %v465_v50, %v313_v58 }
 0x313   :  { %v322_v60 = vsel %vm319_vm15, %v321_v59, %v317_v36 }
 0x314   :  { %v323_v35 = vmul.f32 %v467_v57, %v322_v60 }
 0x316   :  { %v324_v62 = vmul.f32 %v323_v35, %v281_v23 }
 0x318   :  { %v326_v0 = vmul.f32 %v601_v44, %v324_v62  ;;  %v334_v1 = vmul.f32 %v333_v61, %v324_v62 }
 0x31a   :  { %327 = vadd.xlane.f32.xlu1 %v326_v0 }
 0x38d   :  { %v328_v4 = vpop.xlane.xlu1 %327 }
 0x38e   :  { %v329_v5 = vmul.f32 2.0, %v328_v4 }
 0x390   :  { %v330_v7 = vadd.f32 1.0, %v329_v5 }
 0x392   :  { %v331_v8 = vadd.f32 %v330_v7, %v325_v2  ;;  %v337_v9 = vadd.f32 %v336_v6, %v330_v7 }
 0x394   :  { %v332_v11 = vmul.f32 %v601_v44, %v331_v8  ;;  %v338_v12 = vmax.f32 %v337_v9, 1e-15 }
 0x396   :  { %468 = vrcp.f32 %v338_v12  ;;  %v335_v13 = vadd.f32 %v334_v1, %v332_v11  ;;  %v350_v40 = vand.u32 2147483648, %v338_v12  ;;  %v348_v16 = vand.u32 2147483647, %v338_v12 }
 0x397   :  { %vm344_vm1 = vweird.f32 %v338_v12 }
 0x398   :  { %v351_v38 = vor.u32 1.1754944e-38, %v350_v40  ;;  %vm349_vm3 = vcmp.eq.f32.partialorder %v348_v16, 8.507059e+37 }
 0x39c   :  { %v469_v39 = vpop.eup %468 }
 0x39d   :  { %v340_v14 = vmul.f32 %v469_v39, %v338_v12  ;;  %vm345_vm0 = vweird.f32 %v469_v39 }
 0x39e   :  { %vm346_vm2 = vmor %vm344_vm1, %vm345_vm0 }
 0x39f   :  { %v341_v15 = vsub.f32 1.0, %v340_v14 }
 0x3a1   :  { %v342_v18 = vmul.f32 %v469_v39, %v341_v15 }
 0x3a3   :  { %v343_v17 = vadd.f32 %v469_v39, %v342_v18 }
 0x3a5   :  { %v347_v63 = vsel %vm346_vm2, %v469_v39, %v343_v17 }
 0x3a6   :  { %v352_v19 = vsel %vm349_vm3, %v351_v38, %v347_v63 }
 0x3a7   :  { %v353_v20 = vmul.f32 %v352_v19, %v335_v13 }
 0x3a9   :  { %v354_v21 = vmul.f32 %v353_v20, %v353_v20 }
 0x3ab   :  { %355 = vadd.xlane.f32.xlu0 %v354_v21 }
 0x41e   :  { %v356_v44 = vpop.xlane.xlu0 %355 }
 0x41f   :  { %v357_v22 = vmax.f32 %v356_v44, 1e-15 }
 0x421   :  { %470 = vrsqrt.f32 %v357_v22  ;;  %vm365_vm4 = vcmp.eq.f32.partialorder %v357_v22, inf  ;;  %v368_v24 = vand.u32 2147483648, %v357_v22  ;;  %vm367_vm5 = vcmp.eq.f32.partialorder %v357_v22, 0.0 }
 0x427   :  { %v471_v23 = vpop.eup %470 }
 0x428   :  { %v359_v25 = vmul.f32 %v471_v23, %v357_v22 }
 0x42a   :  { %v360_v26 = vmul.f32 %v471_v23, %v359_v25 }
 0x42c   :  { %v361_v27 = vmul.f32 0.5, %v360_v26 }
 0x42e   :  { %v362_v28 = vsub.f32 1.5, %v361_v27 }
 0x430   :  { %v363_v29 = vmul.f32 %v471_v23, %v362_v28 }
 0x432   :  { %v364_v30 = vmul.f32 %v363_v29, %v357_v22 }
 0x434   :  { %v366_v31 = vsel %vm365_vm4, %v357_v22, %v364_v30 }
 0x435   :  { %v369_v10 = vsel %vm367_vm5, %v368_v24, %v366_v31 }
 0x436   :  { %v426_v32 = vclamps-f32 %v369_v10, 0.9999999  ;;  %v403_v56 = vand.u32 2147483648, %v369_v10  ;;  %vm397_vm11 = vweird.f32 %v369_v10  ;;  %v401_v58 = vand.u32 2147483647, %v369_v10 }
 0x438   :  { %v373_v33 = vsub.f32 1.0, %v426_v32  ;;  %v372_v50 = vadd.f32 1.0, %v426_v32  ;;  %v404_v60 = vor.u32 1.1754944e-38, %v403_v56  ;;  %vm402_vm13 = vcmp.eq.f32.partialorder %v401_v58, 8.507059e+37 }
 0x43a   :  { %472 = vrcp.f32 %v373_v33  ;;  %v385_v42 = vand.u32 2147483648, %v373_v33  ;;  %v383_v46 = vand.u32 2147483647, %v373_v33  ;;  %vm379_vm7 = vweird.f32 %v373_v33 }
 0x43b   :  { %474 = vrcp.f32 %v369_v10 }
 0x43c   :  { %v386_v48 = vor.u32 1.1754944e-38, %v385_v42  ;;  %vm384_vm9 = vcmp.eq.f32.partialorder %v383_v46, 8.507059e+37 }
 0x440   :  { %v473_v3 = vpop.eup %472 }
 0x441   :  { %v475_v34 = vpop.eup %474  ;;  %v375_v37 = vmul.f32 %v473_v3, %v373_v33  ;;  %vm380_vm6 = vweird.f32 %v473_v3 }
 0x442   :  { %v393_v43 = vmul.f32 %v475_v34, %v369_v10  ;;  %vm381_vm8 = vmor %vm379_vm7, %vm380_vm6  ;;  %vm398_vm10 = vweird.f32 %v475_v34 }
 0x443   :  { %v376_v41 = vsub.f32 1.0, %v375_v37  ;;  %vm399_vm12 = vmor %vm397_vm11, %vm398_vm10 }
 0x444   :  { %v394_v49 = vsub.f32 1.0, %v393_v43 }
 0x445   :  { %v377_v45 = vmul.f32 %v473_v3, %v376_v41 }
 0x446   :  { %v395_v54 = vmul.f32 %v475_v34, %v394_v49 }
 0x447   :  { %v378_v47 = vadd.f32 %v473_v3, %v377_v45 }
 0x448   :  { %v396_v55 = vadd.f32 %v475_v34, %v395_v54 }
 0x449   :  { %v382_v51 = vsel %vm381_vm8, %v473_v3, %v378_v47 }
 0x44a   :  { %v387_v52 = vsel %vm384_vm9, %v386_v48, %v382_v51  ;;  %v400_v57 = vsel %vm399_vm12, %v475_v34, %v396_v55 }
 0x44b   :  { %v388_v53 = vmul.f32 %v387_v52, %v372_v50  ;;  %v405_v61 = vsel %vm402_vm13, %v404_v60, %v400_v57 }
 0x44d   :  { %476 = vlog2.f32 %v388_v53 }
 0x453   :  { %v477_v59 = vpop.eup %476 }
 0x454   :  { %v390_v36 = vmul.f32 0.6931472, %v477_v59 }
 0x456   :  { %v391_v35 = vmul.f32 0.5, %v390_v36 }
 0x458   :  { %v406_v62 = vmul.f32 %v405_v61, %v391_v35 }
 0x45a   :  { %v407_v0 = vmul.f32 %v406_v62, %v353_v20 }
 0x45c   :  { %408 = vst [vmem:[#allocation3] sm:$0xff] %v407_v0 }
 0x45d   :  { %419 = dma.vmem_to_hbm [thread:$0]  %s415_s24, 128, %s417_s27, [#allocation4]  }
 0x45e   :  { %502 = dma.done.wait [#allocation4], 128  }
 0x45f   :  { %503 = vsyncadd [#allocation4], 4294967168 }
 0x460   :  { %424 = vsyncpa [#allocation4], 1 }

</bundles_post_ra>
